<compile_context>
chip_gen: v7x
topology: tpu7x:2x2x1
jax: 0.10.0
libtpu: 0.0.40
codegen_flags: <defaults>
</compile_context>

<pallas_src>
import functools

import jax
import jax.numpy as jnp
from jax.experimental import pallas as pl
from jax.experimental.pallas import tpu as pltpu


# ------------------------------- Pallas kernel --------------------------------

def _upconv_kernel(x_ref, br_ref, up_ref, m_ref,
                   w1_ref, g1_ref, b1_ref, w2_ref, g2_ref, b2_ref,
                   out_ref, col1_ref, col2_ref, *, H, W, Bs, eps):
    HW = H * W
    L = Bs * HW
    Cx = x_ref.shape[1]
    Cb = br_ref.shape[1]
    Cin1 = Cx + Cb
    Cout = out_ref.shape[1]
    col_dtype = col1_ref.dtype

    # ---- bilinear x2 upsample (align_corners=True): one bf16 MXU matmul ------
    # up(C, L) = x(C, Bs*HinWin) @ block_diag(kron(A_H, A_W).T)  (built in wrapper)
    up = jnp.dot(x_ref[0].astype(up_ref.dtype), up_ref[...],
                 preferred_element_type=jnp.float32)            # (Cx, L) f32
    br = br_ref[0]                                              # (Cb, L) f32

    # static per-tap lane shifts for a 3x3, stride-1, zero-pad-1 conv
    shifts = tuple((k // 3 - 1) * W + (k % 3 - 1) for k in range(9))

    # ---- conv1 im2col: 9 rolled+masked taps of [up ; bridge] -> (9*Cin1, L) ---
    # (no concat scratch: both sources go straight into their im2col rows)
    for k, s in enumerate(shifts):
        if s == 0:
            t_up, t_br = up, br
        else:
            m = m_ref[k:k + 1, :]                               # (1, L) f32 mask
            t_up = pltpu.roll(up, shift=(-s) % L, axis=1) * m
            t_br = pltpu.roll(br, shift=(-s) % L, axis=1) * m
        base = k * Cin1
        col1_ref[base:base + Cx, :] = t_up.astype(col_dtype)
        col1_ref[base + Cx:base + Cin1, :] = t_br.astype(col_dtype)

    def inorm_relu(y, g, b):
        # InstanceNorm2d(affine=True) + ReLU, per image segment on the lane axis.
        # One reduction pass (sum, sum of squares); gamma/rsqrt/beta folded into
        # a single scale + shift.
        inv = 1.0 / HW
        segs = []
        for i in range(Bs):
            z = y[:, i * HW:(i + 1) * HW]
            mean = jnp.sum(z, axis=1, keepdims=True) * inv
            ex2 = jnp.sum(z * z, axis=1, keepdims=True) * inv
            scale = g * jax.lax.rsqrt(ex2 - mean * mean + eps)
            shift = b - mean * scale
            segs.append(jnp.maximum(z * scale + shift, 0.0))
        return segs[0] if Bs == 1 else jnp.concatenate(segs, axis=1)

    # conv1 as a single K = 9*Cin1 matmul, then fused IN + ReLU
    h = inorm_relu(
        jnp.dot(w1_ref[...], col1_ref[...], preferred_element_type=jnp.float32),
        g1_ref[...], b1_ref[...])

    # ---- conv2 im2col from h -> (9*Cout, L), then single matmul + IN + ReLU ---
    for k, s in enumerate(shifts):
        if s == 0:
            t = h
        else:
            t = pltpu.roll(h, shift=(-s) % L, axis=1) * m_ref[k:k + 1, :]
        col2_ref[k * Cout:(k + 1) * Cout, :] = t.astype(col_dtype)

    out = inorm_relu(
        jnp.dot(w2_ref[...], col2_ref[...], preferred_element_type=jnp.float32),
        g2_ref[...], b2_ref[...])
    out_ref[0] = out.astype(out_ref.dtype)


# --------------------------------- wrapper ------------------------------------

def _interp_matrix(n_in, n_out):
    """(n_out, n_in) 1-D bilinear interpolation matrix, align_corners=True."""
    if n_in == 1:
        return jnp.ones((n_out, 1), jnp.float32)
    src = jnp.arange(n_out, dtype=jnp.float32) * (n_in - 1) / (n_out - 1)
    i0 = jnp.clip(jnp.floor(src).astype(jnp.int32), 0, n_in - 2)
    frac = src - i0.astype(jnp.float32)
    return (jax.nn.one_hot(i0, n_in, dtype=jnp.float32) * (1.0 - frac)[:, None]
            + jax.nn.one_hot(i0 + 1, n_in, dtype=jnp.float32) * frac[:, None])


def _tap_masks(H, W):
    """(9, H*W) f32 validity masks for the 9 taps of a 3x3 zero-padded conv."""
    p = jnp.arange(H * W, dtype=jnp.int32)
    row, col = p // W, p % W
    masks = []
    for k in range(9):
        dy, dx = k // 3 - 1, k % 3 - 1
        valid = ((row + dy >= 0) & (row + dy < H) &
                 (col + dx >= 0) & (col + dx < W))
        masks.append(valid.astype(jnp.float32))
    return jnp.stack(masks, axis=0)


def _default_grid_steps(B):
    # One grid step per TensorCore: v5e/v6e have 1 TC -> single fused-batch step;
    # v7x has 2 TCs -> split the batch across the grid so both cores get work.
    try:
        n_cores = int(getattr(jax.devices()[0], "num_cores", 1) or 1)
    except Exception:
        n_cores = 1
    steps = max(1, min(B, n_cores))
    while B % steps:
        steps -= 1
    return steps


def upconv_block_forward(x, bridge, params, *, eps=1e-5, grid_steps=None,
                         mxu_dtype=jnp.bfloat16):
    """UpConvBlock forward. x: (B, Cx, Hin, Win), bridge: (B, Cb, H, W) -> (B, Cout, H, W)."""
    B, Cx, Hin, Win = x.shape
    Bb, Cb, H, W = bridge.shape
    assert B == Bb
    # TODO(synk): the F.pad branch (when 2*Hin/2*Win != bridge spatial size) is not
    # implemented; shapes here match exactly after the x2 upsample.
    assert (2 * Hin, 2 * Win) == (H, W), "size-mismatch pad path not implemented"
    HW = H * W
    assert HW % 128 == 0, "lane rolls / lane reductions assume H*W is lane-exact (x128)"
    Cin1 = Cx + Cb
    Cout = params["w1"].shape[0]
    assert params["w1"].shape == (Cout, Cin1, 3, 3)
    assert params["w2"].shape == (Cout, Cout, 3, 3)

    if grid_steps is None:
        grid_steps = _default_grid_steps(B)
    assert B % grid_steps == 0
    Bs = B // grid_steps            # images folded onto lanes per grid step
    L = Bs * HW
    Lx = Bs * Hin * Win

    # Batch folded onto the lane axis: per-step (C, Bs*H*W) slabs (image-major lanes).
    x_steps = (x.reshape(grid_steps, Bs, Cx, Hin * Win)
                .transpose(0, 2, 1, 3).reshape(grid_steps, Cx, Lx))
    br_steps = (bridge.reshape(grid_steps, Bs, Cb, HW)
                .transpose(0, 2, 1, 3).reshape(grid_steps, Cb, L))

    # Fold the separable align_corners bilinear upsample into one matrix; with
    # several images per step it becomes block-diagonal over the images.
    up_mat = jnp.kron(_interp_matrix(Hin, H), _interp_matrix(Win, W)).T  # (HinWin, HW)
    if Bs > 1:
        up_mat = jnp.kron(jnp.eye(Bs, dtype=up_mat.dtype), up_mat)       # (Lx, L)
    up_mat = up_mat.astype(mxu_dtype)

    # Precomputed boundary masks, tiled per image on the lane axis.
    masks = jnp.tile(_tap_masks(H, W), (1, Bs))                          # (9, L) f32

    # Conv weights flattened to lane-dense (Cout, 9*Cin) matching im2col row order
    # (row = k*Cin + cin, k = ky*3 + kx).
    w1 = jnp.transpose(params["w1"], (0, 2, 3, 1)).reshape(Cout, 9 * Cin1).astype(mxu_dtype)
    w2 = jnp.transpose(params["w2"], (0, 2, 3, 1)).reshape(Cout, 9 * Cout).astype(mxu_dtype)
    g1 = params["g1"].reshape(Cout, 1).astype(jnp.float32)
    b1 = params["b1"].reshape(Cout, 1).astype(jnp.float32)
    g2 = params["g2"].reshape(Cout, 1).astype(jnp.float32)
    b2 = params["b2"].reshape(Cout, 1).astype(jnp.float32)

    kernel = functools.partial(_upconv_kernel, H=H, W=W, Bs=Bs, eps=eps)
    step3 = lambda i: (i, 0, 0)
    const2 = lambda i: (0, 0)

    # TODO(synk): for realistic U-Net sizes (C~256, H=W~64) the full-slab design must
    # tile the HW axis into the grid with halo-aware masks to stay within v7x's 64 MiB
    # VMEM; at these toy shapes the whole working set is < 1 MiB.
    out = pl.pallas_call(
        kernel,
        out_shape=jax.ShapeDtypeStruct((grid_steps, Cout, L), jnp.float32),
        grid_spec=pltpu.PrefetchScalarGridSpec(
            num_scalar_prefetch=0,
            grid=(grid_steps,),
            in_specs=[
                pl.BlockSpec((1, Cx, Lx), step3),     # x slab (per step)
                pl.BlockSpec((1, Cb, L), step3),      # bridge slab (per step)
                pl.BlockSpec(up_mat.shape, const2),   # upsample matrix (resident)
                pl.BlockSpec(masks.shape, const2),    # 9 boundary masks (resident)
                pl.BlockSpec(w1.shape, const2),
                pl.BlockSpec(g1.shape, const2),
                pl.BlockSpec(b1.shape, const2),
                pl.BlockSpec(w2.shape, const2),
                pl.BlockSpec(g2.shape, const2),
                pl.BlockSpec(b2.shape, const2),
            ],
            out_specs=pl.BlockSpec((1, Cout, L), step3),   # lane-dense output
            scratch_shapes=[pltpu.VMEM((9 * Cin1, L), mxu_dtype),   # im2col conv1
                            pltpu.VMEM((9 * Cout, L), mxu_dtype)],  # im2col conv2
        ),
        compiler_params=pltpu.CompilerParams(
            dimension_semantics=("parallel",),
            vmem_limit_bytes=32 * 1024 * 1024),
    )(x_steps, br_steps, up_mat, masks, w1, g1, b1, w2, g2, b2)

    out = (out.reshape(grid_steps, Cout, Bs, HW).transpose(0, 2, 1, 3)
              .reshape(B, Cout, H, W))
    return out


# ----------------------------- pure-JAX reference -----------------------------

def _bilinear_upsample_ref(x, Hout, Wout):
    """F.interpolate(scale_factor=2, mode='bilinear', align_corners=True)."""
    B, C, Hin, Win = x.shape

    def coords(n_in, n_out):
        src = jnp.arange(n_out, dtype=jnp.float32) * (n_in - 1) / max(n_out - 1, 1)
        i0 = jnp.clip(jnp.floor(src).astype(jnp.int32), 0, max(n_in - 2, 0))
        frac = src - i0.astype(jnp.float32)
        return i0, frac

    y0, fy = coords(Hin, Hout)
    x0, fx = coords(Win, Wout)
    top = x[:, :, y0, :]
    bot = x[:, :, jnp.minimum(y0 + 1, Hin - 1), :]
    v = top * (1.0 - fy)[None, None, :, None] + bot * fy[None, None, :, None]
    left = v[:, :, :, x0]
    right = v[:, :, :, jnp.minimum(x0 + 1, Win - 1)]
    return left * (1.0 - fx) + right * fx


def upconv_block_reference(x, bridge, params, *, eps=1e-5):
    B, Cx, Hin, Win = x.shape
    _, Cb, H, W = bridge.shape
    up = _bilinear_upsample_ref(x, H, W)
    h = jnp.concatenate([up, bridge], axis=1)

    def conv(a, w):
        return jax.lax.conv_general_dilated(
            a, w, window_strides=(1, 1), padding=((1, 1), (1, 1)),
            dimension_numbers=('NCHW', 'OIHW', 'NCHW'),
            precision=jax.lax.Precision.HIGHEST)

    def inorm_relu(a, gamma, beta):
        mean = jnp.mean(a, axis=(2, 3), keepdims=True)
        var = jnp.var(a, axis=(2, 3), keepdims=True)
        y = (a - mean) * jax.lax.rsqrt(var + eps)
        y = y * gamma[None, :, None, None] + beta[None, :, None, None]
        return jnp.maximum(y, 0.0)

    h = inorm_relu(conv(h, params["w1"]), params["g1"], params["b1"])
    h = inorm_relu(conv(h, params["w2"]), params["g2"], params["b2"])
    return h


def make_params(key, input_dim, output_dim):
    """Deterministic synthetic parameters (conv weights bias-free, InstanceNorm affine)."""
    ks = jax.random.split(key, 6)
    s = 0.1
    return {
        "w1": s * jax.random.normal(ks[0], (output_dim, input_dim, 3, 3), jnp.float32),
        "g1": 1.0 + s * jax.random.normal(ks[1], (output_dim,), jnp.float32),
        "b1": s * jax.random.normal(ks[2], (output_dim,), jnp.float32),
        "w2": s * jax.random.normal(ks[3], (output_dim, output_dim, 3, 3), jnp.float32),
        "g2": 1.0 + s * jax.random.normal(ks[4], (output_dim,), jnp.float32),
        "b2": s * jax.random.normal(ks[5], (output_dim,), jnp.float32),
    }


if __name__ == "__main__":
    # UpConvBlock(input_dim=16, output_dim=8, bilinear=True, padding=1):
    # x (decoder path, to be upsampled x2) + bridge (skip connection).
    B = 2
    Cx, Cb = 8, 8            # Cx + Cb == input_dim == 16
    Hin, Win = 8, 8
    H, W = 16, 16
    Cout = 8                 # output_dim

    key = jax.random.PRNGKey(0)
    kx, kb, kp = jax.random.split(key, 3)
    x = jax.random.normal(kx, (B, Cx, Hin, Win), jnp.float32)
    bridge = jax.random.normal(kb, (B, Cb, H, W), jnp.float32)
    params = make_params(kp, Cx + Cb, Cout)

    out = jax.block_until_ready(upconv_block_forward(x, bridge, params))
    ref = jax.block_until_ready(upconv_block_reference(x, bridge, params))

    assert out.shape == (B, Cout, H, W), out.shape
    # MXU operands are bf16 (per perf review) with f32 accumulation/normalization,
    # so the tolerance vs the f32 HIGHEST-precision reference is relaxed accordingly.
    max_err = float(jnp.max(jnp.abs(out - ref)))
    assert jnp.allclose(out, ref, atol=3e-2, rtol=3e-2), max_err

    print("KERNEL_OK")
</pallas_src>

<mosaic_0001>
module attributes {stable_mosaic.version = 11 : i64} {
  func.func @_upconv_kernel(%arg0: i32, %arg1: memref<1x8x128xf32, #tpu.memory_space<vmem>>, %arg2: memref<1x8x512xf32, #tpu.memory_space<vmem>>, %arg3: memref<128x512xbf16, #tpu.memory_space<vmem>>, %arg4: memref<9x512xf32, #tpu.memory_space<vmem>>, %arg5: memref<8x144xbf16, #tpu.memory_space<vmem>>, %arg6: memref<8x1xf32, #tpu.memory_space<vmem>>, %arg7: memref<8x1xf32, #tpu.memory_space<vmem>>, %arg8: memref<8x72xbf16, #tpu.memory_space<vmem>>, %arg9: memref<8x1xf32, #tpu.memory_space<vmem>>, %arg10: memref<8x1xf32, #tpu.memory_space<vmem>>, %arg11: memref<1x8x512xf32, #tpu.memory_space<vmem>>, %arg12: memref<144x512xbf16, #tpu.memory_space<vmem>>, %arg13: memref<72x512xbf16, #tpu.memory_space<vmem>>) attributes {dimension_semantics = [#tpu.dimension_semantics<parallel>], iteration_bounds = array<i64: 1>, scalar_prefetch = 0 : i64, scratch_operands = 2 : i64, tpu.core_type = #tpu.core_type<tc>, window_params = [{transform_indices = @transform_0, window_bounds = array<i64: 1, 8, 128>}, {transform_indices = @transform_1, window_bounds = array<i64: 1, 8, 512>}, {pipeline_mode = #tpu.pipeline_mode<synchronous>, transform_indices = @transform_2, window_bounds = array<i64: 128, 512>}, {pipeline_mode = #tpu.pipeline_mode<synchronous>, transform_indices = @transform_3, window_bounds = array<i64: 9, 512>}, {pipeline_mode = #tpu.pipeline_mode<synchronous>, transform_indices = @transform_4, window_bounds = array<i64: 8, 144>}, {pipeline_mode = #tpu.pipeline_mode<synchronous>, transform_indices = @transform_5, window_bounds = array<i64: 8, 1>}, {pipeline_mode = #tpu.pipeline_mode<synchronous>, transform_indices = @transform_6, window_bounds = array<i64: 8, 1>}, {pipeline_mode = #tpu.pipeline_mode<synchronous>, transform_indices = @transform_7, window_bounds = array<i64: 8, 72>}, {pipeline_mode = #tpu.pipeline_mode<synchronous>, transform_indices = @transform_8, window_bounds = array<i64: 8, 1>}, {pipeline_mode = #tpu.pipeline_mode<synchronous>, transform_indices = @transform_9, window_bounds = array<i64: 8, 1>}, {transform_indices = @transform_10, window_bounds = array<i64: 1, 8, 512>}]} {
    %c0 = arith.constant 0 : index
    %c0_0 = arith.constant 0 : index
    %c0_1 = arith.constant 0 : index
    %0 = vector.load %arg1[%c0, %c0_0, %c0_1] : memref<1x8x128xf32, #tpu.memory_space<vmem>>, vector<1x8x128xf32>
    %1 = vector.shape_cast %0 : vector<1x8x128xf32> to vector<8x128xf32>
    %2 = arith.truncf %1 : vector<8x128xf32> to vector<8x128xbf16>
    %c0_2 = arith.constant 0 : index
    %c0_3 = arith.constant 0 : index
    %3 = vector.load %arg3[%c0_2, %c0_3] : memref<128x512xbf16, #tpu.memory_space<vmem>>, vector<128x512xbf16>
    %cst = arith.constant dense<0.000000e+00> : vector<8x512xf32>
    %4 = tpu.matmul %2, %3, %cst {dimension_numbers = #tpu.dot_dimension_numbers<[1], [0], [0], [1], [0, 0, 1, 1], [], []>} : vector<8x128xbf16>, vector<128x512xbf16>, vector<8x512xf32> -> vector<8x512xf32>
    %c0_4 = arith.constant 0 : index
    %c0_5 = arith.constant 0 : index
    %c0_6 = arith.constant 0 : index
    %5 = vector.load %arg2[%c0_4, %c0_5, %c0_6] : memref<1x8x512xf32, #tpu.memory_space<vmem>>, vector<1x8x512xf32>
    %6 = vector.shape_cast %5 : vector<1x8x512xf32> to vector<8x512xf32>
    %c0_7 = arith.constant 0 : index
    %c0_8 = arith.constant 0 : index
    %7 = vector.load %arg4[%c0_7, %c0_8] : memref<9x512xf32, #tpu.memory_space<vmem>>, vector<1x512xf32>
    %c17_i32 = arith.constant 17 : i32
    %8 = tpu.dynamic_rotate %4 by %c17_i32 dim 1 : vector<8x512xf32>, i32 -> vector<8x512xf32>
    %9 = vector.broadcast %7 : vector<1x512xf32> to vector<8x512xf32>
    %10 = arith.mulf %8, %9 : vector<8x512xf32>
    %c17_i32_9 = arith.constant 17 : i32
    %11 = tpu.dynamic_rotate %6 by %c17_i32_9 dim 1 : vector<8x512xf32>, i32 -> vector<8x512xf32>
    %12 = vector.broadcast %7 : vector<1x512xf32> to vector<8x512xf32>
    %13 = arith.mulf %11, %12 : vector<8x512xf32>
    %14 = arith.truncf %10 : vector<8x512xf32> to vector<8x512xbf16>
    %c0_10 = arith.constant 0 : index
    %c0_11 = arith.constant 0 : index
    %15 = vector.load %arg12[%c0_10, %c0_11] : memref<144x512xbf16, #tpu.memory_space<vmem>>, vector<8x512xbf16>
    tpu.vector_store %arg12[%c0_10, %c0_11], %14 {strides = array<i32>} : memref<144x512xbf16, #tpu.memory_space<vmem>>, vector<8x512xbf16>,
    %16 = arith.truncf %13 : vector<8x512xf32> to vector<8x512xbf16>
    %c8 = arith.constant 8 : index
    %c0_12 = arith.constant 0 : index
    %17 = vector.load %arg12[%c8, %c0_12] : memref<144x512xbf16, #tpu.memory_space<vmem>>, vector<8x512xbf16>
    tpu.vector_store %arg12[%c8, %c0_12], %16 {strides = array<i32>} : memref<144x512xbf16, #tpu.memory_space<vmem>>, vector<8x512xbf16>,
    %c1 = arith.constant 1 : index
    %c0_13 = arith.constant 0 : index
    %18 = vector.load %arg4[%c1, %c0_13] : memref<9x512xf32, #tpu.memory_space<vmem>>, vector<1x512xf32>
    %c16_i32 = arith.constant 16 : i32
    %19 = tpu.dynamic_rotate %4 by %c16_i32 dim 1 : vector<8x512xf32>, i32 -> vector<8x512xf32>
    %20 = vector.broadcast %18 : vector<1x512xf32> to vector<8x512xf32>
    %21 = arith.mulf %19, %20 : vector<8x512xf32>
    %c16_i32_14 = arith.constant 16 : i32
    %22 = tpu.dynamic_rotate %6 by %c16_i32_14 dim 1 : vector<8x512xf32>, i32 -> vector<8x512xf32>
    %23 = vector.broadcast %18 : vector<1x512xf32> to vector<8x512xf32>
    %24 = arith.mulf %22, %23 : vector<8x512xf32>
    %25 = arith.truncf %21 : vector<8x512xf32> to vector<8x512xbf16>
    %c16 = arith.constant 16 : index
    %c0_15 = arith.constant 0 : index
    %26 = vector.load %arg12[%c16, %c0_15] : memref<144x512xbf16, #tpu.memory_space<vmem>>, vector<8x512xbf16>
    tpu.vector_store %arg12[%c16, %c0_15], %25 {strides = array<i32>} : memref<144x512xbf16, #tpu.memory_space<vmem>>, vector<8x512xbf16>,
    %27 = arith.truncf %24 : vector<8x512xf32> to vector<8x512xbf16>
    %c24 = arith.constant 24 : index
    %c0_16 = arith.constant 0 : index
    %28 = vector.load %arg12[%c24, %c0_16] : memref<144x512xbf16, #tpu.memory_space<vmem>>, vector<8x512xbf16>
    tpu.vector_store %arg12[%c24, %c0_16], %27 {strides = array<i32>} : memref<144x512xbf16, #tpu.memory_space<vmem>>, vector<8x512xbf16>,
    %c2 = arith.constant 2 : index
    %c0_17 = arith.constant 0 : index
    %29 = vector.load %arg4[%c2, %c0_17] : memref<9x512xf32, #tpu.memory_space<vmem>>, vector<1x512xf32>
    %c15_i32 = arith.constant 15 : i32
    %30 = tpu.dynamic_rotate %4 by %c15_i32 dim 1 : vector<8x512xf32>, i32 -> vector<8x512xf32>
    %31 = vector.broadcast %29 : vector<1x512xf32> to vector<8x512xf32>
    %32 = arith.mulf %30, %31 : vector<8x512xf32>
    %c15_i32_18 = arith.constant 15 : i32
    %33 = tpu.dynamic_rotate %6 by %c15_i32_18 dim 1 : vector<8x512xf32>, i32 -> vector<8x512xf32>
    %34 = vector.broadcast %29 : vector<1x512xf32> to vector<8x512xf32>
    %35 = arith.mulf %33, %34 : vector<8x512xf32>
    %36 = arith.truncf %32 : vector<8x512xf32> to vector<8x512xbf16>
    %c32 = arith.constant 32 : index
    %c0_19 = arith.constant 0 : index
    %37 = vector.load %arg12[%c32, %c0_19] : memref<144x512xbf16, #tpu.memory_space<vmem>>, vector<8x512xbf16>
    tpu.vector_store %arg12[%c32, %c0_19], %36 {strides = array<i32>} : memref<144x512xbf16, #tpu.memory_space<vmem>>, vector<8x512xbf16>,
    %38 = arith.truncf %35 : vector<8x512xf32> to vector<8x512xbf16>
    %c40 = arith.constant 40 : index
    %c0_20 = arith.constant 0 : index
    %39 = vector.load %arg12[%c40, %c0_20] : memref<144x512xbf16, #tpu.memory_space<vmem>>, vector<8x512xbf16>
    tpu.vector_store %arg12[%c40, %c0_20], %38 {strides = array<i32>} : memref<144x512xbf16, #tpu.memory_space<vmem>>, vector<8x512xbf16>,
    %c3 = arith.constant 3 : index
    %c0_21 = arith.constant 0 : index
    %40 = vector.load %arg4[%c3, %c0_21] : memref<9x512xf32, #tpu.memory_space<vmem>>, vector<1x512xf32>
    %c1_i32 = arith.constant 1 : i32
    %41 = tpu.dynamic_rotate %4 by %c1_i32 dim 1 : vector<8x512xf32>, i32 -> vector<8x512xf32>
    %42 = vector.broadcast %40 : vector<1x512xf32> to vector<8x512xf32>
    %43 = arith.mulf %41, %42 : vector<8x512xf32>
    %c1_i32_22 = arith.constant 1 : i32
    %44 = tpu.dynamic_rotate %6 by %c1_i32_22 dim 1 : vector<8x512xf32>, i32 -> vector<8x512xf32>
    %45 = vector.broadcast %40 : vector<1x512xf32> to vector<8x512xf32>
    %46 = arith.mulf %44, %45 : vector<8x512xf32>
    %47 = arith.truncf %43 : vector<8x512xf32> to vector<8x512xbf16>
    %c48 = arith.constant 48 : index
    %c0_23 = arith.constant 0 : index
    %48 = vector.load %arg12[%c48, %c0_23] : memref<144x512xbf16, #tpu.memory_space<vmem>>, vector<8x512xbf16>
    tpu.vector_store %arg12[%c48, %c0_23], %47 {strides = array<i32>} : memref<144x512xbf16, #tpu.memory_space<vmem>>, vector<8x512xbf16>,
    %49 = arith.truncf %46 : vector<8x512xf32> to vector<8x512xbf16>
    %c56 = arith.constant 56 : index
    %c0_24 = arith.constant 0 : index
    %50 = vector.load %arg12[%c56, %c0_24] : memref<144x512xbf16, #tpu.memory_space<vmem>>, vector<8x512xbf16>
    tpu.vector_store %arg12[%c56, %c0_24], %49 {strides = array<i32>} : memref<144x512xbf16, #tpu.memory_space<vmem>>, vector<8x512xbf16>,
    %51 = arith.truncf %4 : vector<8x512xf32> to vector<8x512xbf16>
    %c64 = arith.constant 64 : index
    %c0_25 = arith.constant 0 : index
    %52 = vector.load %arg12[%c64, %c0_25] : memref<144x512xbf16, #tpu.memory_space<vmem>>, vector<8x512xbf16>
    tpu.vector_store %arg12[%c64, %c0_25], %51 {strides = array<i32>} : memref<144x512xbf16, #tpu.memory_space<vmem>>, vector<8x512xbf16>,
    %53 = arith.truncf %6 : vector<8x512xf32> to vector<8x512xbf16>
    %c72 = arith.constant 72 : index
    %c0_26 = arith.constant 0 : index
    %54 = vector.load %arg12[%c72, %c0_26] : memref<144x512xbf16, #tpu.memory_space<vmem>>, vector<8x512xbf16>
    tpu.vector_store %arg12[%c72, %c0_26], %53 {strides = array<i32>} : memref<144x512xbf16, #tpu.memory_space<vmem>>, vector<8x512xbf16>,
    %c5 = arith.constant 5 : index
    %c0_27 = arith.constant 0 : index
    %55 = vector.load %arg4[%c5, %c0_27] : memref<9x512xf32, #tpu.memory_space<vmem>>, vector<1x512xf32>
    %c511_i32 = arith.constant 511 : i32
    %56 = tpu.dynamic_rotate %4 by %c511_i32 dim 1 : vector<8x512xf32>, i32 -> vector<8x512xf32>
    %57 = vector.broadcast %55 : vector<1x512xf32> to vector<8x512xf32>
    %58 = arith.mulf %56, %57 : vector<8x512xf32>
    %c511_i32_28 = arith.constant 511 : i32
    %59 = tpu.dynamic_rotate %6 by %c511_i32_28 dim 1 : vector<8x512xf32>, i32 -> vector<8x512xf32>
    %60 = vector.broadcast %55 : vector<1x512xf32> to vector<8x512xf32>
    %61 = arith.mulf %59, %60 : vector<8x512xf32>
    %62 = arith.truncf %58 : vector<8x512xf32> to vector<8x512xbf16>
    %c80 = arith.constant 80 : index
    %c0_29 = arith.constant 0 : index
    %63 = vector.load %arg12[%c80, %c0_29] : memref<144x512xbf16, #tpu.memory_space<vmem>>, vector<8x512xbf16>
    tpu.vector_store %arg12[%c80, %c0_29], %62 {strides = array<i32>} : memref<144x512xbf16, #tpu.memory_space<vmem>>, vector<8x512xbf16>,
    %64 = arith.truncf %61 : vector<8x512xf32> to vector<8x512xbf16>
    %c88 = arith.constant 88 : index
    %c0_30 = arith.constant 0 : index
    %65 = vector.load %arg12[%c88, %c0_30] : memref<144x512xbf16, #tpu.memory_space<vmem>>, vector<8x512xbf16>
    tpu.vector_store %arg12[%c88, %c0_30], %64 {strides = array<i32>} : memref<144x512xbf16, #tpu.memory_space<vmem>>, vector<8x512xbf16>,
    %c6 = arith.constant 6 : index
    %c0_31 = arith.constant 0 : index
    %66 = vector.load %arg4[%c6, %c0_31] : memref<9x512xf32, #tpu.memory_space<vmem>>, vector<1x512xf32>
    %c497_i32 = arith.constant 497 : i32
    %67 = tpu.dynamic_rotate %4 by %c497_i32 dim 1 : vector<8x512xf32>, i32 -> vector<8x512xf32>
    %68 = vector.broadcast %66 : vector<1x512xf32> to vector<8x512xf32>
    %69 = arith.mulf %67, %68 : vector<8x512xf32>
    %c497_i32_32 = arith.constant 497 : i32
    %70 = tpu.dynamic_rotate %6 by %c497_i32_32 dim 1 : vector<8x512xf32>, i32 -> vector<8x512xf32>
    %71 = vector.broadcast %66 : vector<1x512xf32> to vector<8x512xf32>
    %72 = arith.mulf %70, %71 : vector<8x512xf32>
    %73 = arith.truncf %69 : vector<8x512xf32> to vector<8x512xbf16>
    %c96 = arith.constant 96 : index
    %c0_33 = arith.constant 0 : index
    %74 = vector.load %arg12[%c96, %c0_33] : memref<144x512xbf16, #tpu.memory_space<vmem>>, vector<8x512xbf16>
    tpu.vector_store %arg12[%c96, %c0_33], %73 {strides = array<i32>} : memref<144x512xbf16, #tpu.memory_space<vmem>>, vector<8x512xbf16>,
    %75 = arith.truncf %72 : vector<8x512xf32> to vector<8x512xbf16>
    %c104 = arith.constant 104 : index
    %c0_34 = arith.constant 0 : index
    %76 = vector.load %arg12[%c104, %c0_34] : memref<144x512xbf16, #tpu.memory_space<vmem>>, vector<8x512xbf16>
    tpu.vector_store %arg12[%c104, %c0_34], %75 {strides = array<i32>} : memref<144x512xbf16, #tpu.memory_space<vmem>>, vector<8x512xbf16>,
    %c7 = arith.constant 7 : index
    %c0_35 = arith.constant 0 : index
    %77 = vector.load %arg4[%c7, %c0_35] : memref<9x512xf32, #tpu.memory_space<vmem>>, vector<1x512xf32>
    %c496_i32 = arith.constant 496 : i32
    %78 = tpu.dynamic_rotate %4 by %c496_i32 dim 1 : vector<8x512xf32>, i32 -> vector<8x512xf32>
    %79 = vector.broadcast %77 : vector<1x512xf32> to vector<8x512xf32>
    %80 = arith.mulf %78, %79 : vector<8x512xf32>
    %c496_i32_36 = arith.constant 496 : i32
    %81 = tpu.dynamic_rotate %6 by %c496_i32_36 dim 1 : vector<8x512xf32>, i32 -> vector<8x512xf32>
    %82 = vector.broadcast %77 : vector<1x512xf32> to vector<8x512xf32>
    %83 = arith.mulf %81, %82 : vector<8x512xf32>
    %84 = arith.truncf %80 : vector<8x512xf32> to vector<8x512xbf16>
    %c112 = arith.constant 112 : index
    %c0_37 = arith.constant 0 : index
    %85 = vector.load %arg12[%c112, %c0_37] : memref<144x512xbf16, #tpu.memory_space<vmem>>, vector<8x512xbf16>
    tpu.vector_store %arg12[%c112, %c0_37], %84 {strides = array<i32>} : memref<144x512xbf16, #tpu.memory_space<vmem>>, vector<8x512xbf16>,
    %86 = arith.truncf %83 : vector<8x512xf32> to vector<8x512xbf16>
    %c120 = arith.constant 120 : index
    %c0_38 = arith.constant 0 : index
    %87 = vector.load %arg12[%c120, %c0_38] : memref<144x512xbf16, #tpu.memory_space<vmem>>, vector<8x512xbf16>
    tpu.vector_store %arg12[%c120, %c0_38], %86 {strides = array<i32>} : memref<144x512xbf16, #tpu.memory_space<vmem>>, vector<8x512xbf16>,
    %c8_39 = arith.constant 8 : index
    %c0_40 = arith.constant 0 : index
    %88 = vector.load %arg4[%c8_39, %c0_40] : memref<9x512xf32, #tpu.memory_space<vmem>>, vector<1x512xf32>
    %c495_i32 = arith.constant 495 : i32
    %89 = tpu.dynamic_rotate %4 by %c495_i32 dim 1 : vector<8x512xf32>, i32 -> vector<8x512xf32>
    %90 = vector.broadcast %88 : vector<1x512xf32> to vector<8x512xf32>
    %91 = arith.mulf %89, %90 : vector<8x512xf32>
    %c495_i32_41 = arith.constant 495 : i32
    %92 = tpu.dynamic_rotate %6 by %c495_i32_41 dim 1 : vector<8x512xf32>, i32 -> vector<8x512xf32>
    %93 = vector.broadcast %88 : vector<1x512xf32> to vector<8x512xf32>
    %94 = arith.mulf %92, %93 : vector<8x512xf32>
    %95 = arith.truncf %91 : vector<8x512xf32> to vector<8x512xbf16>
    %c128 = arith.constant 128 : index
    %c0_42 = arith.constant 0 : index
    %96 = vector.load %arg12[%c128, %c0_42] : memref<144x512xbf16, #tpu.memory_space<vmem>>, vector<8x512xbf16>
    tpu.vector_store %arg12[%c128, %c0_42], %95 {strides = array<i32>} : memref<144x512xbf16, #tpu.memory_space<vmem>>, vector<8x512xbf16>,
    %97 = arith.truncf %94 : vector<8x512xf32> to vector<8x512xbf16>
    %c136 = arith.constant 136 : index
    %c0_43 = arith.constant 0 : index
    %98 = vector.load %arg12[%c136, %c0_43] : memref<144x512xbf16, #tpu.memory_space<vmem>>, vector<8x512xbf16>
    tpu.vector_store %arg12[%c136, %c0_43], %97 {strides = array<i32>} : memref<144x512xbf16, #tpu.memory_space<vmem>>, vector<8x512xbf16>,
    %c0_44 = arith.constant 0 : index
    %c0_45 = arith.constant 0 : index
    %99 = vector.load %arg5[%c0_44, %c0_45] : memref<8x144xbf16, #tpu.memory_space<vmem>>, vector<8x144xbf16>
    %c0_46 = arith.constant 0 : index
    %c0_47 = arith.constant 0 : index
    %100 = vector.load %arg12[%c0_46, %c0_47] : memref<144x512xbf16, #tpu.memory_space<vmem>>, vector<144x512xbf16>
    %cst_48 = arith.constant dense<0.000000e+00> : vector<8x512xf32>
    %101 = tpu.matmul %99, %100, %cst_48 {dimension_numbers = #tpu.dot_dimension_numbers<[1], [0], [0], [1], [0, 0, 1, 1], [], []>} : vector<8x144xbf16>, vector<144x512xbf16>, vector<8x512xf32> -> vector<8x512xf32>
    %c0_49 = arith.constant 0 : index
    %c0_50 = arith.constant 0 : index
    %102 = vector.load %arg6[%c0_49, %c0_50] : memref<8x1xf32, #tpu.memory_space<vmem>>, vector<8x1xf32>
    %c0_51 = arith.constant 0 : index
    %c0_52 = arith.constant 0 : index
    %103 = vector.load %arg7[%c0_51, %c0_52] : memref<8x1xf32, #tpu.memory_space<vmem>>, vector<8x1xf32>
    %104 = vector.extract_strided_slice %101 {offsets = [0, 0], sizes = [8, 256], strides = [1, 1]} : vector<8x512xf32> to vector<8x256xf32>
    %cst_53 = arith.constant dense<0.000000e+00> : vector<8xf32>
    %105 = vector.multi_reduction <add>, %104, %cst_53 [1] : vector<8x256xf32> to vector<8xf32>
    %106 = vector.shape_cast %105 : vector<8xf32> to vector<8x1xf32>
    %cst_54 = arith.constant 3.906250e-03 : f32
    %107 = vector.broadcast %cst_54 : f32 to vector<8x1xf32>
    %108 = arith.mulf %106, %107 : vector<8x1xf32>
    %109 = arith.mulf %104, %104 : vector<8x256xf32>
    %cst_55 = arith.constant dense<0.000000e+00> : vector<8xf32>
    %110 = vector.multi_reduction <add>, %109, %cst_55 [1] : vector<8x256xf32> to vector<8xf32>
    %111 = vector.shape_cast %110 : vector<8xf32> to vector<8x1xf32>
    %cst_56 = arith.constant 3.906250e-03 : f32
    %112 = vector.broadcast %cst_56 : f32 to vector<8x1xf32>
    %113 = arith.mulf %111, %112 : vector<8x1xf32>
    %114 = arith.mulf %108, %108 : vector<8x1xf32>
    %115 = arith.subf %113, %114 : vector<8x1xf32>
    %cst_57 = arith.constant 9.99999974E-6 : f32
    %116 = vector.broadcast %cst_57 : f32 to vector<8x1xf32>
    %117 = arith.addf %115, %116 : vector<8x1xf32>
    %118 = math.rsqrt %117 : vector<8x1xf32>
    %119 = arith.mulf %102, %118 : vector<8x1xf32>
    %120 = arith.mulf %108, %119 : vector<8x1xf32>
    %121 = arith.subf %103, %120 : vector<8x1xf32>
    %122 = vector.broadcast %119 : vector<8x1xf32> to vector<8x256xf32>
    %123 = arith.mulf %104, %122 : vector<8x256xf32>
    %124 = vector.broadcast %121 : vector<8x1xf32> to vector<8x256xf32>
    %125 = arith.addf %123, %124 : vector<8x256xf32>
    %cst_58 = arith.constant 0.000000e+00 : f32
    %126 = vector.broadcast %cst_58 : f32 to vector<8x256xf32>
    %127 = arith.maximumf %125, %126 : vector<8x256xf32>
    %128 = vector.extract_strided_slice %101 {offsets = [0, 256], sizes = [8, 256], strides = [1, 1]} : vector<8x512xf32> to vector<8x256xf32>
    %cst_59 = arith.constant dense<0.000000e+00> : vector<8xf32>
    %129 = vector.multi_reduction <add>, %128, %cst_59 [1] : vector<8x256xf32> to vector<8xf32>
    %130 = vector.shape_cast %129 : vector<8xf32> to vector<8x1xf32>
    %cst_60 = arith.constant 3.906250e-03 : f32
    %131 = vector.broadcast %cst_60 : f32 to vector<8x1xf32>
    %132 = arith.mulf %130, %131 : vector<8x1xf32>
    %133 = arith.mulf %128, %128 : vector<8x256xf32>
    %cst_61 = arith.constant dense<0.000000e+00> : vector<8xf32>
    %134 = vector.multi_reduction <add>, %133, %cst_61 [1] : vector<8x256xf32> to vector<8xf32>
    %135 = vector.shape_cast %134 : vector<8xf32> to vector<8x1xf32>
    %cst_62 = arith.constant 3.906250e-03 : f32
    %136 = vector.broadcast %cst_62 : f32 to vector<8x1xf32>
    %137 = arith.mulf %135, %136 : vector<8x1xf32>
    %138 = arith.mulf %132, %132 : vector<8x1xf32>
    %139 = arith.subf %137, %138 : vector<8x1xf32>
    %cst_63 = arith.constant 9.99999974E-6 : f32
    %140 = vector.broadcast %cst_63 : f32 to vector<8x1xf32>
    %141 = arith.addf %139, %140 : vector<8x1xf32>
    %142 = math.rsqrt %141 : vector<8x1xf32>
    %143 = arith.mulf %102, %142 : vector<8x1xf32>
    %144 = arith.mulf %132, %143 : vector<8x1xf32>
    %145 = arith.subf %103, %144 : vector<8x1xf32>
    %146 = vector.broadcast %143 : vector<8x1xf32> to vector<8x256xf32>
    %147 = arith.mulf %128, %146 : vector<8x256xf32>
    %148 = vector.broadcast %145 : vector<8x1xf32> to vector<8x256xf32>
    %149 = arith.addf %147, %148 : vector<8x256xf32>
    %cst_64 = arith.constant 0.000000e+00 : f32
    %150 = vector.broadcast %cst_64 : f32 to vector<8x256xf32>
    %151 = arith.maximumf %149, %150 : vector<8x256xf32>
    %152 = tpu.concatenate %127, %151 in 1 : vector<8x256xf32>, vector<8x256xf32> -> vector<8x512xf32>
    %c17_i32_65 = arith.constant 17 : i32
    %153 = tpu.dynamic_rotate %152 by %c17_i32_65 dim 1 : vector<8x512xf32>, i32 -> vector<8x512xf32>
    %c0_66 = arith.constant 0 : index
    %c0_67 = arith.constant 0 : index
    %154 = vector.load %arg4[%c0_66, %c0_67] : memref<9x512xf32, #tpu.memory_space<vmem>>, vector<1x512xf32>
    %155 = vector.broadcast %154 : vector<1x512xf32> to vector<8x512xf32>
    %156 = arith.mulf %153, %155 : vector<8x512xf32>
    %157 = arith.truncf %156 : vector<8x512xf32> to vector<8x512xbf16>
    %c0_68 = arith.constant 0 : index
    %c0_69 = arith.constant 0 : index
    %158 = vector.load %arg13[%c0_68, %c0_69] : memref<72x512xbf16, #tpu.memory_space<vmem>>, vector<8x512xbf16>
    tpu.vector_store %arg13[%c0_68, %c0_69], %157 {strides = array<i32>} : memref<72x512xbf16, #tpu.memory_space<vmem>>, vector<8x512xbf16>,
    %c16_i32_70 = arith.constant 16 : i32
    %159 = tpu.dynamic_rotate %152 by %c16_i32_70 dim 1 : vector<8x512xf32>, i32 -> vector<8x512xf32>
    %c1_71 = arith.constant 1 : index
    %c0_72 = arith.constant 0 : index
    %160 = vector.load %arg4[%c1_71, %c0_72] : memref<9x512xf32, #tpu.memory_space<vmem>>, vector<1x512xf32>
    %161 = vector.broadcast %160 : vector<1x512xf32> to vector<8x512xf32>
    %162 = arith.mulf %159, %161 : vector<8x512xf32>
    %163 = arith.truncf %162 : vector<8x512xf32> to vector<8x512xbf16>
    %c8_73 = arith.constant 8 : index
    %c0_74 = arith.constant 0 : index
    %164 = vector.load %arg13[%c8_73, %c0_74] : memref<72x512xbf16, #tpu.memory_space<vmem>>, vector<8x512xbf16>
    tpu.vector_store %arg13[%c8_73, %c0_74], %163 {strides = array<i32>} : memref<72x512xbf16, #tpu.memory_space<vmem>>, vector<8x512xbf16>,
    %c15_i32_75 = arith.constant 15 : i32
    %165 = tpu.dynamic_rotate %152 by %c15_i32_75 dim 1 : vector<8x512xf32>, i32 -> vector<8x512xf32>
    %c2_76 = arith.constant 2 : index
    %c0_77 = arith.constant 0 : index
    %166 = vector.load %arg4[%c2_76, %c0_77] : memref<9x512xf32, #tpu.memory_space<vmem>>, vector<1x512xf32>
    %167 = vector.broadcast %166 : vector<1x512xf32> to vector<8x512xf32>
    %168 = arith.mulf %165, %167 : vector<8x512xf32>
    %169 = arith.truncf %168 : vector<8x512xf32> to vector<8x512xbf16>
    %c16_78 = arith.constant 16 : index
    %c0_79 = arith.constant 0 : index
    %170 = vector.load %arg13[%c16_78, %c0_79] : memref<72x512xbf16, #tpu.memory_space<vmem>>, vector<8x512xbf16>
    tpu.vector_store %arg13[%c16_78, %c0_79], %169 {strides = array<i32>} : memref<72x512xbf16, #tpu.memory_space<vmem>>, vector<8x512xbf16>,
    %c1_i32_80 = arith.constant 1 : i32
    %171 = tpu.dynamic_rotate %152 by %c1_i32_80 dim 1 : vector<8x512xf32>, i32 -> vector<8x512xf32>
    %c3_81 = arith.constant 3 : index
    %c0_82 = arith.constant 0 : index
    %172 = vector.load %arg4[%c3_81, %c0_82] : memref<9x512xf32, #tpu.memory_space<vmem>>, vector<1x512xf32>
    %173 = vector.broadcast %172 : vector<1x512xf32> to vector<8x512xf32>
    %174 = arith.mulf %171, %173 : vector<8x512xf32>
    %175 = arith.truncf %174 : vector<8x512xf32> to vector<8x512xbf16>
    %c24_83 = arith.constant 24 : index
    %c0_84 = arith.constant 0 : index
    %176 = vector.load %arg13[%c24_83, %c0_84] : memref<72x512xbf16, #tpu.memory_space<vmem>>, vector<8x512xbf16>
    tpu.vector_store %arg13[%c24_83, %c0_84], %175 {strides = array<i32>} : memref<72x512xbf16, #tpu.memory_space<vmem>>, vector<8x512xbf16>,
    %177 = arith.truncf %152 : vector<8x512xf32> to vector<8x512xbf16>
    %c32_85 = arith.constant 32 : index
    %c0_86 = arith.constant 0 : index
    %178 = vector.load %arg13[%c32_85, %c0_86] : memref<72x512xbf16, #tpu.memory_space<vmem>>, vector<8x512xbf16>
    tpu.vector_store %arg13[%c32_85, %c0_86], %177 {strides = array<i32>} : memref<72x512xbf16, #tpu.memory_space<vmem>>, vector<8x512xbf16>,
    %c511_i32_87 = arith.constant 511 : i32
    %179 = tpu.dynamic_rotate %152 by %c511_i32_87 dim 1 : vector<8x512xf32>, i32 -> vector<8x512xf32>
    %c5_88 = arith.constant 5 : index
    %c0_89 = arith.constant 0 : index
    %180 = vector.load %arg4[%c5_88, %c0_89] : memref<9x512xf32, #tpu.memory_space<vmem>>, vector<1x512xf32>
    %181 = vector.broadcast %180 : vector<1x512xf32> to vector<8x512xf32>
    %182 = arith.mulf %179, %181 : vector<8x512xf32>
    %183 = arith.truncf %182 : vector<8x512xf32> to vector<8x512xbf16>
    %c40_90 = arith.constant 40 : index
    %c0_91 = arith.constant 0 : index
    %184 = vector.load %arg13[%c40_90, %c0_91] : memref<72x512xbf16, #tpu.memory_space<vmem>>, vector<8x512xbf16>
    tpu.vector_store %arg13[%c40_90, %c0_91], %183 {strides = array<i32>} : memref<72x512xbf16, #tpu.memory_space<vmem>>, vector<8x512xbf16>,
    %c497_i32_92 = arith.constant 497 : i32
    %185 = tpu.dynamic_rotate %152 by %c497_i32_92 dim 1 : vector<8x512xf32>, i32 -> vector<8x512xf32>
    %c6_93 = arith.constant 6 : index
    %c0_94 = arith.constant 0 : index
    %186 = vector.load %arg4[%c6_93, %c0_94] : memref<9x512xf32, #tpu.memory_space<vmem>>, vector<1x512xf32>
    %187 = vector.broadcast %186 : vector<1x512xf32> to vector<8x512xf32>
    %188 = arith.mulf %185, %187 : vector<8x512xf32>
    %189 = arith.truncf %188 : vector<8x512xf32> to vector<8x512xbf16>
    %c48_95 = arith.constant 48 : index
    %c0_96 = arith.constant 0 : index
    %190 = vector.load %arg13[%c48_95, %c0_96] : memref<72x512xbf16, #tpu.memory_space<vmem>>, vector<8x512xbf16>
    tpu.vector_store %arg13[%c48_95, %c0_96], %189 {strides = array<i32>} : memref<72x512xbf16, #tpu.memory_space<vmem>>, vector<8x512xbf16>,
    %c496_i32_97 = arith.constant 496 : i32
    %191 = tpu.dynamic_rotate %152 by %c496_i32_97 dim 1 : vector<8x512xf32>, i32 -> vector<8x512xf32>
    %c7_98 = arith.constant 7 : index
    %c0_99 = arith.constant 0 : index
    %192 = vector.load %arg4[%c7_98, %c0_99] : memref<9x512xf32, #tpu.memory_space<vmem>>, vector<1x512xf32>
    %193 = vector.broadcast %192 : vector<1x512xf32> to vector<8x512xf32>
    %194 = arith.mulf %191, %193 : vector<8x512xf32>
    %195 = arith.truncf %194 : vector<8x512xf32> to vector<8x512xbf16>
    %c56_100 = arith.constant 56 : index
    %c0_101 = arith.constant 0 : index
    %196 = vector.load %arg13[%c56_100, %c0_101] : memref<72x512xbf16, #tpu.memory_space<vmem>>, vector<8x512xbf16>
    tpu.vector_store %arg13[%c56_100, %c0_101], %195 {strides = array<i32>} : memref<72x512xbf16, #tpu.memory_space<vmem>>, vector<8x512xbf16>,
    %c495_i32_102 = arith.constant 495 : i32
    %197 = tpu.dynamic_rotate %152 by %c495_i32_102 dim 1 : vector<8x512xf32>, i32 -> vector<8x512xf32>
    %c8_103 = arith.constant 8 : index
    %c0_104 = arith.constant 0 : index
    %198 = vector.load %arg4[%c8_103, %c0_104] : memref<9x512xf32, #tpu.memory_space<vmem>>, vector<1x512xf32>
    %199 = vector.broadcast %198 : vector<1x512xf32> to vector<8x512xf32>
    %200 = arith.mulf %197, %199 : vector<8x512xf32>
    %201 = arith.truncf %200 : vector<8x512xf32> to vector<8x512xbf16>
    %c64_105 = arith.constant 64 : index
    %c0_106 = arith.constant 0 : index
    %202 = vector.load %arg13[%c64_105, %c0_106] : memref<72x512xbf16, #tpu.memory_space<vmem>>, vector<8x512xbf16>
    tpu.vector_store %arg13[%c64_105, %c0_106], %201 {strides = array<i32>} : memref<72x512xbf16, #tpu.memory_space<vmem>>, vector<8x512xbf16>,
    %c0_107 = arith.constant 0 : index
    %c0_108 = arith.constant 0 : index
    %203 = vector.load %arg8[%c0_107, %c0_108] : memref<8x72xbf16, #tpu.memory_space<vmem>>, vector<8x72xbf16>
    %c0_109 = arith.constant 0 : index
    %c0_110 = arith.constant 0 : index
    %204 = vector.load %arg13[%c0_109, %c0_110] : memref<72x512xbf16, #tpu.memory_space<vmem>>, vector<72x512xbf16>
    %cst_111 = arith.constant dense<0.000000e+00> : vector<8x512xf32>
    %205 = tpu.matmul %203, %204, %cst_111 {dimension_numbers = #tpu.dot_dimension_numbers<[1], [0], [0], [1], [0, 0, 1, 1], [], []>} : vector<8x72xbf16>, vector<72x512xbf16>, vector<8x512xf32> -> vector<8x512xf32>
    %c0_112 = arith.constant 0 : index
    %c0_113 = arith.constant 0 : index
    %206 = vector.load %arg9[%c0_112, %c0_113] : memref<8x1xf32, #tpu.memory_space<vmem>>, vector<8x1xf32>
    %c0_114 = arith.constant 0 : index
    %c0_115 = arith.constant 0 : index
    %207 = vector.load %arg10[%c0_114, %c0_115] : memref<8x1xf32, #tpu.memory_space<vmem>>, vector<8x1xf32>
    %208 = vector.extract_strided_slice %205 {offsets = [0, 0], sizes = [8, 256], strides = [1, 1]} : vector<8x512xf32> to vector<8x256xf32>
    %cst_116 = arith.constant dense<0.000000e+00> : vector<8xf32>
    %209 = vector.multi_reduction <add>, %208, %cst_116 [1] : vector<8x256xf32> to vector<8xf32>
    %210 = vector.shape_cast %209 : vector<8xf32> to vector<8x1xf32>
    %cst_117 = arith.constant 3.906250e-03 : f32
    %211 = vector.broadcast %cst_117 : f32 to vector<8x1xf32>
    %212 = arith.mulf %210, %211 : vector<8x1xf32>
    %213 = arith.mulf %208, %208 : vector<8x256xf32>
    %cst_118 = arith.constant dense<0.000000e+00> : vector<8xf32>
    %214 = vector.multi_reduction <add>, %213, %cst_118 [1] : vector<8x256xf32> to vector<8xf32>
    %215 = vector.shape_cast %214 : vector<8xf32> to vector<8x1xf32>
    %cst_119 = arith.constant 3.906250e-03 : f32
    %216 = vector.broadcast %cst_119 : f32 to vector<8x1xf32>
    %217 = arith.mulf %215, %216 : vector<8x1xf32>
    %218 = arith.mulf %212, %212 : vector<8x1xf32>
    %219 = arith.subf %217, %218 : vector<8x1xf32>
    %cst_120 = arith.constant 9.99999974E-6 : f32
    %220 = vector.broadcast %cst_120 : f32 to vector<8x1xf32>
    %221 = arith.addf %219, %220 : vector<8x1xf32>
    %222 = math.rsqrt %221 : vector<8x1xf32>
    %223 = arith.mulf %206, %222 : vector<8x1xf32>
    %224 = arith.mulf %212, %223 : vector<8x1xf32>
    %225 = arith.subf %207, %224 : vector<8x1xf32>
    %226 = vector.broadcast %223 : vector<8x1xf32> to vector<8x256xf32>
    %227 = arith.mulf %208, %226 : vector<8x256xf32>
    %228 = vector.broadcast %225 : vector<8x1xf32> to vector<8x256xf32>
    %229 = arith.addf %227, %228 : vector<8x256xf32>
    %cst_121 = arith.constant 0.000000e+00 : f32
    %230 = vector.broadcast %cst_121 : f32 to vector<8x256xf32>
    %231 = arith.maximumf %229, %230 : vector<8x256xf32>
    %232 = vector.extract_strided_slice %205 {offsets = [0, 256], sizes = [8, 256], strides = [1, 1]} : vector<8x512xf32> to vector<8x256xf32>
    %cst_122 = arith.constant dense<0.000000e+00> : vector<8xf32>
    %233 = vector.multi_reduction <add>, %232, %cst_122 [1] : vector<8x256xf32> to vector<8xf32>
    %234 = vector.shape_cast %233 : vector<8xf32> to vector<8x1xf32>
    %cst_123 = arith.constant 3.906250e-03 : f32
    %235 = vector.broadcast %cst_123 : f32 to vector<8x1xf32>
    %236 = arith.mulf %234, %235 : vector<8x1xf32>
    %237 = arith.mulf %232, %232 : vector<8x256xf32>
    %cst_124 = arith.constant dense<0.000000e+00> : vector<8xf32>
    %238 = vector.multi_reduction <add>, %237, %cst_124 [1] : vector<8x256xf32> to vector<8xf32>
    %239 = vector.shape_cast %238 : vector<8xf32> to vector<8x1xf32>
    %cst_125 = arith.constant 3.906250e-03 : f32
    %240 = vector.broadcast %cst_125 : f32 to vector<8x1xf32>
    %241 = arith.mulf %239, %240 : vector<8x1xf32>
    %242 = arith.mulf %236, %236 : vector<8x1xf32>
    %243 = arith.subf %241, %242 : vector<8x1xf32>
    %cst_126 = arith.constant 9.99999974E-6 : f32
    %244 = vector.broadcast %cst_126 : f32 to vector<8x1xf32>
    %245 = arith.addf %243, %244 : vector<8x1xf32>
    %246 = math.rsqrt %245 : vector<8x1xf32>
    %247 = arith.mulf %206, %246 : vector<8x1xf32>
    %248 = arith.mulf %236, %247 : vector<8x1xf32>
    %249 = arith.subf %207, %248 : vector<8x1xf32>
    %250 = vector.broadcast %247 : vector<8x1xf32> to vector<8x256xf32>
    %251 = arith.mulf %232, %250 : vector<8x256xf32>
    %252 = vector.broadcast %249 : vector<8x1xf32> to vector<8x256xf32>
    %253 = arith.addf %251, %252 : vector<8x256xf32>
    %cst_127 = arith.constant 0.000000e+00 : f32
    %254 = vector.broadcast %cst_127 : f32 to vector<8x256xf32>
    %255 = arith.maximumf %253, %254 : vector<8x256xf32>
    %256 = tpu.concatenate %231, %255 in 1 : vector<8x256xf32>, vector<8x256xf32> -> vector<8x512xf32>
    %c0_128 = arith.constant 0 : index
    %c0_129 = arith.constant 0 : index
    %c0_130 = arith.constant 0 : index
    %257 = vector.load %arg11[%c0_128, %c0_129, %c0_130] : memref<1x8x512xf32, #tpu.memory_space<vmem>>, vector<1x8x512xf32>
    %258 = vector.shape_cast %257 : vector<1x8x512xf32> to vector<8x512xf32>
    %259 = vector.shape_cast %256 : vector<8x512xf32> to vector<1x8x512xf32>
    tpu.vector_store %arg11[%c0_128, %c0_129, %c0_130], %259 {strides = array<i32>} : memref<1x8x512xf32, #tpu.memory_space<vmem>>, vector<1x8x512xf32>,
    return
  }
  func.func @transform_0(%arg0: i32) -> (i32, i32, i32) {
    %c0_i32 = arith.constant 0 : i32
    %c0_i32_0 = arith.constant 0 : i32
    %c0_i32_1 = arith.constant 0 : i32
    return %arg0, %c0_i32, %c0_i32_0 : i32, i32, i32
  }
  func.func @transform_1(%arg0: i32) -> (i32, i32, i32) {
    %c0_i32 = arith.constant 0 : i32
    %c0_i32_0 = arith.constant 0 : i32
    %c0_i32_1 = arith.constant 0 : i32
    return %arg0, %c0_i32, %c0_i32_0 : i32, i32, i32
  }
  func.func @transform_2(%arg0: i32) -> (i32, i32) {
    %c0_i32 = arith.constant 0 : i32
    %c0_i32_0 = arith.constant 0 : i32
    %c0_i32_1 = arith.constant 0 : i32
    return %c0_i32, %c0_i32_0 : i32, i32
  }
  func.func @transform_3(%arg0: i32) -> (i32, i32) {
    %c0_i32 = arith.constant 0 : i32
    %c0_i32_0 = arith.constant 0 : i32
    %c0_i32_1 = arith.constant 0 : i32
    return %c0_i32, %c0_i32_0 : i32, i32
  }
  func.func @transform_4(%arg0: i32) -> (i32, i32) {
    %c0_i32 = arith.constant 0 : i32
    %c0_i32_0 = arith.constant 0 : i32
    %c0_i32_1 = arith.constant 0 : i32
    return %c0_i32, %c0_i32_0 : i32, i32
  }
  func.func @transform_5(%arg0: i32) -> (i32, i32) {
    %c0_i32 = arith.constant 0 : i32
    %c0_i32_0 = arith.constant 0 : i32
    %c0_i32_1 = arith.constant 0 : i32
    return %c0_i32, %c0_i32_0 : i32, i32
  }
  func.func @transform_6(%arg0: i32) -> (i32, i32) {
    %c0_i32 = arith.constant 0 : i32
    %c0_i32_0 = arith.constant 0 : i32
    %c0_i32_1 = arith.constant 0 : i32
    return %c0_i32, %c0_i32_0 : i32, i32
  }
  func.func @transform_7(%arg0: i32) -> (i32, i32) {
    %c0_i32 = arith.constant 0 : i32
    %c0_i32_0 = arith.constant 0 : i32
    %c0_i32_1 = arith.constant 0 : i32
    return %c0_i32, %c0_i32_0 : i32, i32
  }
  func.func @transform_8(%arg0: i32) -> (i32, i32) {
    %c0_i32 = arith.constant 0 : i32
    %c0_i32_0 = arith.constant 0 : i32
    %c0_i32_1 = arith.constant 0 : i32
    return %c0_i32, %c0_i32_0 : i32, i32
  }
  func.func @transform_9(%arg0: i32) -> (i32, i32) {
    %c0_i32 = arith.constant 0 : i32
    %c0_i32_0 = arith.constant 0 : i32
    %c0_i32_1 = arith.constant 0 : i32
    return %c0_i32, %c0_i32_0 : i32, i32
  }
  func.func @transform_10(%arg0: i32) -> (i32, i32, i32) {
    %c0_i32 = arith.constant 0 : i32
    %c0_i32_0 = arith.constant 0 : i32
    %c0_i32_1 = arith.constant 0 : i32
    return %arg0, %c0_i32, %c0_i32_0 : i32, i32, i32
  }
}

</mosaic_0001>

<bundles_post_ra>
// kernel: tpu_custom_call.1
= control target key start
LH: loop header
LB: loop body
LE: loop exit
PB: predicated region body
PF: predicated region fallthrough
CT: control target
= control target key end

     0   :  { %15 = vsyncpa [#allocation5], 0  ;;  %s3054_s0 = inlined_call_operand.hbm [shape: f32[1,8,128], index: 0, kind: input, shape index: {}]   ;;  %s3055_s1 = inlined_call_operand.vmem [shape: f32[1,8,512], index: 1, kind: input, shape index: {}]   ;;  %s3056_s2 = inlined_call_operand.hbm [shape: bf16[128,512], index: 2, kind: input, shape index: {}]   ;;  %s3057_s3 = inlined_call_operand.hbm [shape: f32[9,512], index: 3, kind: input, shape index: {}]   ;;  %s3058_s4 = inlined_call_operand.vmem [shape: bf16[8,144], index: 4, kind: input, shape index: {}]   ;;  %s3059_s5 = inlined_call_operand.vmem [shape: f32[8,1], index: 5, kind: input, shape index: {}]   ;;  %s3060_s6 = inlined_call_operand.vmem [shape: f32[8,1], index: 6, kind: input, shape index: {}]   ;;  %s3061_s7 = inlined_call_operand.vmem [shape: bf16[8,72], index: 7, kind: input, shape index: {}]   ;;  %s3062_s8 = inlined_call_operand.vmem [shape: f32[8,1], index: 8, kind: input, shape index: {}]   ;;  %s3063_s9 = inlined_call_operand.vmem [shape: f32[8,1], index: 9, kind: input, shape index: {}]   ;;  %s3064_s10 = inlined_call_operand.hbm [shape: f32[1,8,512], index: 10, kind: output, shape index: {}]  }
   0x1   :  { %16 = vsyncpa [#allocation8], 0 }
   0x2   :  { %17 = vsyncpa [#allocation6], 0  ;;  %s2302_s13 = smov [#allocation7]   ;;  %s2208_s17 = scalar_lea.hbm %s3056_s2, 4096 }
   0x3   :  { %s35_s14 = sshll.u32 %s2302_s13, 4  ;;  %p2209_p0 = scmp.ne.s32.totalorder %s3056_s2, %s2208_s17  ;;  %s36_s14 = int_to_ptr.vmem [resolvable:$true] %s35_s14 }
   0x4   :  { %p2212_p1 = scmp.lt.u32.totalorder %s2208_s17, %s3056_s2 }
   0x6   :  { %p2214_p2 = pnand %p2212_p1, %p2209_p0 }
   0x8   :  { %2217 = shalt.err (!%p2214_p2)
}
   0x9   :  { %s2218_s22 = scalar_lea.vmem %s36_s14, 4096  ;;  %p2223_p4 = scmp.lt.s32.totalorder %s36_s14, %s36_s14 }
   0xa   :  { %p2219_p3 = scmp.ne.s32.totalorder %s36_s14, %s2218_s22  ;;  %p2224_p5 = scmp.lt.s32.totalorder %s2218_s22, %s2218_s22 }
   0xc   :  { %p2225_p6 = por %p2224_p5, %p2223_p4 }
   0xe   :  { %p2226_p7 = pnand %p2225_p6, %p2219_p3 }
  0x10   :  { %2229 = shalt.err (!%p2226_p7)
}
  0x11   :  { %s2303_s23 = smov 256   ;;  %s2304_s24 = smov 16  }
  0x12   :  { %41 = dma.hbm_to_vmem [thread:$0]  %s3056_s2, 4096, %s36_s14, [#allocation8], %s2303_s23, %s2303_s23, %s2304_s24  }
  0x13   :  { %s2305_s27 = smov [#allocation4]   ;;  %s2306_s29 = smov [#allocation9]  }
  0x14   :  { %s24_s28 = sshll.u32 %s2305_s27, 4  ;;  %s47_s30 = sshll.u32 %s2306_s29, 4  ;;  %s25_s28 = int_to_ptr.vmem [resolvable:$true] %s24_s28  ;;  %s48_s30 = int_to_ptr.vmem [resolvable:$true] %s47_s30 }
  0x15   :  { %s2230_s13 = scalar_lea.hbm %s3054_s0, 128 }
  0x16   :  { %p2231_p8 = scmp.ne.s32.totalorder %s3054_s0, %s2230_s13  ;;  %p2234_p9 = scmp.lt.u32.totalorder %s2230_s13, %s3054_s0 }
  0x18   :  { %p2236_p10 = pnand %p2234_p9, %p2231_p8 }
  0x1a   :  { %2239 = shalt.err (!%p2236_p10)
}
  0x1b   :  { %s2240_s2 = scalar_lea.vmem %s25_s28, 128  ;;  %p2245_p12 = scmp.lt.s32.totalorder %s25_s28, %s25_s28 }
  0x1c   :  { %p2241_p11 = scmp.ne.s32.totalorder %s25_s28, %s2240_s2  ;;  %p2246_p13 = scmp.lt.s32.totalorder %s2240_s2, %s2240_s2 }
  0x1e   :  { %p2247_p0 = por %p2246_p13, %p2245_p12 }
  0x20   :  { %p2248_p1 = pnand %p2247_p0, %p2241_p11 }
  0x22   :  { %2251 = shalt.err (!%p2248_p1)
}
  0x23   :  { %27 = dma.hbm_to_vmem [thread:$0]  %s3054_s0, 128, %s25_s28, [#allocation5]  }
  0x24   :  { %s2252_s22 = scalar_lea.hbm %s3057_s3, 1024 }
  0x25   :  { %p2253_p2 = scmp.ne.s32.totalorder %s3057_s3, %s2252_s22  ;;  %p2256_p3 = scmp.lt.u32.totalorder %s2252_s22, %s3057_s3 }
  0x27   :  { %p2258_p4 = pnand %p2256_p3, %p2253_p2 }
  0x29   :  { %2261 = shalt.err (!%p2258_p4)
}
  0x2a   :  { %s2262_s29 = scalar_lea.vmem %s48_s30, 1024  ;;  %p2267_p6 = scmp.lt.s32.totalorder %s48_s30, %s48_s30 }
  0x2b   :  { %p2263_p5 = scmp.ne.s32.totalorder %s48_s30, %s2262_s29  ;;  %p2268_p7 = scmp.lt.s32.totalorder %s2262_s29, %s2262_s29 }
  0x2d   :  { %p2269_p8 = por %p2268_p7, %p2267_p6 }
  0x2f   :  { %p2270_p9 = pnand %p2269_p8, %p2263_p5 }
  0x31   :  { %2273 = shalt.err (!%p2270_p9)
}
  0x32   :  { %s2307_s0 = smov 512   ;;  %s2308_s28 = smov 32  }
  0x33   :  { %53 = dma.hbm_to_vmem [thread:$0]  %s3057_s3, 1024, %s48_s30, [#allocation8], %s2307_s0, %s2307_s0, %s2308_s28  }
  0x34   :  { %2296 = dma.done.wait [#allocation5], 128  }
  0x35   :  { %2297 = vsyncadd [#allocation5], 4294967168 }
  0x36   :  { %2298 = dma.done.wait [#allocation8], 5120  }
  0x37   :  { %2299 = vsyncadd [#allocation8], 4294962176  ;;  %v2309_v0 = vmov 0   ;;  %v2150_v1 = vld [vmem:[#allocation7 + $0x4] ss:$16 sps:$4 sm:$0xff]   ;;  %v2417_v26 = vld [vmem:[%s3055_s1 + $0x10] sm:$0xff]  ;;  %v365_v49 = vlaneseq }
  0x38   :  { %302 = vmatprep.mubr.bf16.mxu0 %v2309_v0  ;;  %343 = vmatprep.mubr.bf16.mxu1 %v2309_v0  ;;  %v2152_v2 = vld [vmem:[#allocation7] ss:$16 sps:$4 sm:$0xff]   ;;  %v2153_v3 = vld [vmem:[#allocation7 + $0xc] ss:$16 sps:$4 sm:$0xff]   ;;  %v2155_v4 = vld [vmem:[#allocation7 + $0x8] ss:$16 sps:$4 sm:$0xff]   ;;  %v703_v44 = vpack.c.bf16 %v2417_v26, %v2417_v26 }
  0x39   :  { %2148 = vset.pattern.permute.xlu1 %v2309_v0  ;;  %2149 = vset.pattern.permute.xlu0 %v2309_v0  ;;  %v2156_v5 = vld [vmem:[#allocation7 + $0x24] ss:$16 sps:$4 sm:$0xff]   ;;  %v2158_v6 = vld [vmem:[#allocation7 + $0x20] ss:$16 sps:$4 sm:$0xff]   ;;  %v2159_v7 = vld [vmem:[#allocation7 + $0x2c] ss:$16 sps:$4 sm:$0xff]  }
  0x3a   :  { %270 = vmatprep.subr.bf16.mxu0 %v2150_v1  ;;  %311 = vmatprep.subr.bf16.mxu1 %v2153_v3  ;;  %v2161_v8 = vld [vmem:[#allocation7 + $0x28] ss:$16 sps:$4 sm:$0xff]   ;;  %v2162_v9 = vld [vmem:[#allocation7 + $0x44] ss:$16 sps:$4 sm:$0xff]   ;;  %v2164_v10 = vld [vmem:[#allocation7 + $0x40] ss:$16 sps:$4 sm:$0xff]  }
  0x3b   :  { %271 = vmatpush1.bf16.msra.mxu0 %v2152_v2  ;;  %312 = vmatpush1.bf16.msra.mxu1 %v2155_v4  ;;  %v2165_v11 = vld [vmem:[#allocation7 + $0x4c] ss:$16 sps:$4 sm:$0xff]   ;;  %v2168_v12 = vld [vmem:[#allocation7 + $0x64] ss:$16 sps:$4 sm:$0xff]   ;;  %v2167_v13 = vld [vmem:[#allocation7 + $0x48] ss:$16 sps:$4 sm:$0xff]  }
  0x3c   :  { %272 = vmatprep.subr.bf16.mxu0 %v2156_v5  ;;  %313 = vmatprep.subr.bf16.mxu1 %v2159_v7  ;;  %v2171_v14 = vld [vmem:[#allocation7 + $0x6c] ss:$16 sps:$4 sm:$0xff]   ;;  %v2170_v15 = vld [vmem:[#allocation7 + $0x60] ss:$16 sps:$4 sm:$0xff]   ;;  %v2174_v16 = vld [vmem:[#allocation7 + $0x84] ss:$16 sps:$4 sm:$0xff]  }
  0x3d   :  { %v2173_v17 = vld [vmem:[#allocation7 + $0x68] ss:$16 sps:$4 sm:$0xff]   ;;  %v2177_v18 = vld [vmem:[#allocation7 + $0x8c] ss:$16 sps:$4 sm:$0xff]   ;;  %v2176_v19 = vld [vmem:[#allocation7 + $0x80] ss:$16 sps:$4 sm:$0xff]  }
  0x3e   :  { %v2180_v20 = vld [vmem:[#allocation7 + $0xa4] ss:$16 sps:$4 sm:$0xff]   ;;  %v2179_v21 = vld [vmem:[#allocation7 + $0x88] ss:$16 sps:$4 sm:$0xff]   ;;  %v2183_v22 = vld [vmem:[#allocation7 + $0xac] ss:$16 sps:$4 sm:$0xff]  }
  0x3f   :  { %273 = vmatpush1.bf16.msra.mxu0 %v2158_v6  ;;  %314 = vmatpush1.bf16.msra.mxu1 %v2161_v8  ;;  %v2182_v23 = vld [vmem:[#allocation7 + $0xa0] ss:$16 sps:$4 sm:$0xff]   ;;  %v2186_v24 = vld [vmem:[#allocation7 + $0xc4] ss:$16 sps:$4 sm:$0xff]   ;;  %v2185_v25 = vld [vmem:[#allocation7 + $0xa8] ss:$16 sps:$4 sm:$0xff]  }
  0x40   :  { %274 = vmatprep.subr.bf16.mxu0 %v2162_v9  ;;  %315 = vmatprep.subr.bf16.mxu1 %v2165_v11  ;;  %v2189_v27 = vld [vmem:[#allocation7 + $0xcc] ss:$16 sps:$4 sm:$0xff]   ;;  %s2310_s13 = smov 17   ;;  %v2188_v29 = vld [vmem:[#allocation7 + $0xc0] ss:$16 sps:$4 sm:$0xff]   ;;  %s2312_s19 = smov 1  }
  0x41   :  { %401 = vrot.lane.b32.xlu1 %v2417_v26, %s2310_s13  ;;  %v352_v28 = vld [vmem:[%s3055_s1] sm:$0xff]  ;;  %v2428_v30 = vld [vmem:[%s3055_s1 + $0x18] sm:$0xff]  ;;  %v353_v32 = vld [vmem:[%s3055_s1 + $0x8] sm:$0xff]  ;;  %s2311_s1 = smov 15   ;;  %s2313_s20 = smov 127   ;;  %v711_v46 = vrot.slane %v703_v44, 4 }
  0x42   :  { %397 = vrot.lane.b32.xlu0 %v352_v28, %s2310_s13  ;;  %v2192_v31 = vld [vmem:[#allocation7 + $0xe4] ss:$16 sps:$4 sm:$0xff]   ;;  %v2191_v33 = vld [vmem:[#allocation7 + $0xc8] ss:$16 sps:$4 sm:$0xff]   ;;  %v2195_v34 = vld [vmem:[#allocation7 + $0xec] ss:$16 sps:$4 sm:$0xff]   ;;  %v701_v39 = vpack.c.bf16 %v352_v28, %v352_v28  ;;  %v702_v40 = vpack.c.bf16 %v353_v32, %v353_v32  ;;  %v704_v43 = vpack.c.bf16 %v2428_v30, %v2428_v30 }
  0x43   :  { %275 = vmatpush1.bf16.msra.mxu0 %v2164_v10  ;;  %316 = vmatpush1.bf16.msra.mxu1 %v2167_v13  ;;  %v2194_v35 = vld [vmem:[#allocation7 + $0xe0] ss:$16 sps:$4 sm:$0xff]   ;;  %v76_v36 = vld [vmem:[#allocation4] sm:$0xff]  ;;  %s2314_s21 = smov 113   ;;  %s2315_s22 = smov 112   ;;  %v374_v50 = vshrl.u32 %v365_v49, 7 }
  0x44   :  { %276 = vmatprep.subr.bf16.mxu0 %v2168_v12  ;;  %317 = vmatprep.subr.bf16.mxu1 %v2171_v14  ;;  %v2197_v37 = vld [vmem:[#allocation7 + $0xe8] ss:$16 sps:$4 sm:$0xff]   ;;  %v77_v38 = vpack.c.bf16 %v76_v36, %v76_v36  ;;  %s2316_s23 = smov 111   ;;  %v709_v41 = vrot.slane %v701_v39, 4  ;;  %v710_v42 = vrot.slane %v702_v40, 4  ;;  %v712_v45 = vrot.slane %v704_v43, 4 }
  0x45   :  { %403 = vrot.lane.b32.xlu1 %v2428_v30, %s2310_s13  ;;  %719 = vst [vmem:[#allocation2 + $0x90] sm:$0xf0] %v711_v46  ;;  %v356_v51 = vld [vmem:[#allocation9] ss:$8 sm:$0xf]  ;;  %v2482_v52 = vand.u32 127, %v365_v49 }
  0x46   :  { %399 = vrot.lane.b32.xlu0 %v353_v32, %s2310_s13  ;;  %717 = vst [vmem:[#allocation2 + $0x80] sm:$0xf0] %v709_v41  ;;  %718 = vst [vmem:[#allocation2 + $0x88] sm:$0xf0] %v710_v42  ;;  %v2484_v53 = vsub.s32 0, %v374_v50  ;;  %v2486_v54 = vsub.s32 1, %v374_v50 }
  0x47   :  { %277 = vmatpush1.bf16.msra.mxu0 %v2170_v15  ;;  %318 = vmatpush1.bf16.msra.mxu1 %v2173_v17  ;;  %720 = vst [vmem:[#allocation2 + $0x98] sm:$0xf0] %v712_v45  ;;  %v2488_v56 = vsub.s32 2, %v374_v50  ;;  %v2490_v57 = vsub.s32 3, %v374_v50  ;;  %vm367_vm0 = vcmp.lt.s32.totalorder %v2482_v52, 17  ;;  %vm451_vm1 = vcmp.lt.s32.totalorder %v2482_v52, 16 }
  0x48   :  { %278 = vmatprep.subr.bf16.mxu0 %v2174_v16  ;;  %319 = vmatprep.subr.bf16.mxu1 %v2177_v18  ;;  %v2494_v59 = vrot.slane %v356_v51, %v2484_v53  ;;  %v2497_v60 = vrot.slane %v356_v51, %v2486_v54  ;;  %v442_v15 = vld [vmem:[#allocation9 + $0x1] ss:$8 sm:$0xf]  ;;  %vm535_vm2 = vcmp.lt.s32.totalorder %v2482_v52, 15  ;;  %vm619_vm3 = vcmp.lt.s32.totalorder %v2482_v52, 1 }
  0x49   :  { %483 = vrot.lane.b32.xlu1 %v353_v32, %s2304_s24  ;;  %v2500_v61 = vrot.slane %v356_v51, %v2490_v57  ;;  %v2507_v1 = vrot.slane %v356_v51, %v2488_v56  ;;  %vm731_vm4 = vcmp.lt.s32.totalorder %v2482_v52, 127  ;;  %vm815_vm5 = vcmp.lt.s32.totalorder %v2482_v52, 113 }
  0x4a   :  { %481 = vrot.lane.b32.xlu0 %v352_v28, %s2304_s24  ;;  %vm899_vm6 = vcmp.lt.s32.totalorder %v2482_v52, 112  ;;  %vm983_vm7 = vcmp.lt.s32.totalorder %v2482_v52, 111  ;;  %vm1100_vm8 = vcmask 130048   ;;  %vm1833_vm9 = vcmask 1043456  }
  0x4b   :  { %279 = vmatpush1.bf16.msra.mxu0 %v2176_v19  ;;  %320 = vmatpush1.bf16.msra.mxu1 %v2179_v21  ;;  %v2522_v21 = vrot.slane %v442_v15, %v2486_v54  ;;  %vm1829_vm10 = vcmask 588800  }
  0x4c   :  { %280 = vmatprep.subr.bf16.mxu0 %v2180_v20  ;;  %321 = vmatprep.subr.bf16.mxu1 %v2183_v22  ;;  %v2519_v20 = vrot.slane %v442_v15, %v2484_v53 }
  0x4d   :  { %487 = vrot.lane.b32.xlu1 %v2428_v30, %s2304_s24 }
  0x4e   :  { %485 = vrot.lane.b32.xlu0 %v2417_v26, %s2304_s24 }
  0x4f   :  { %281 = vmatpush1.bf16.msra.mxu0 %v2182_v23  ;;  %322 = vmatpush1.bf16.msra.mxu1 %v2185_v25 }
  0x50   :  { %282 = vmatprep.subr.bf16.mxu0 %v2186_v24  ;;  %323 = vmatprep.subr.bf16.mxu1 %v2189_v27  ;;  %v2531_v27 = vrot.slane %v442_v15, %v2488_v56 }
  0x51   :  { %567 = vrot.lane.b32.xlu1 %v353_v32, %s2311_s1 }
  0x52   :  { %565 = vrot.lane.b32.xlu0 %v352_v28, %s2311_s1 }
  0x53   :  { %283 = vmatpush1.bf16.msra.mxu0 %v2188_v29  ;;  %324 = vmatpush1.bf16.msra.mxu1 %v2191_v33 }
  0x54   :  { %284 = vmatprep.subr.bf16.mxu0 %v2192_v31  ;;  %325 = vmatprep.subr.bf16.mxu1 %v2195_v34 }
  0x55   :  { %571 = vrot.lane.b32.xlu1 %v2428_v30, %s2311_s1 }
  0x56   :  { %569 = vrot.lane.b32.xlu0 %v2417_v26, %s2311_s1 }
  0x57   :  { %285 = vmatpush1.bf16.msra.mxu0 %v2194_v35  ;;  %326 = vmatpush1.bf16.msra.mxu1 %v2197_v37 }
  0x59   :  { %651 = vrot.lane.b32.xlu1 %v353_v32, %s2312_s19 }
  0x5a   :  { %303 = vmatmul.mubr.bf16.vlgmr.msra.gmra.mrb[0].mxu0 %v77_v38  ;;  %344 = vmatmul.mubr.bf16.vlgmr.msra.gmra.mrb[0].mxu1 %v77_v38 }
  0x5b   :  { %649 = vrot.lane.b32.xlu0 %v352_v28, %s2312_s19 }
  0x5d   :  { %655 = vrot.lane.b32.xlu1 %v2428_v30, %s2312_s19 }
  0x5f   :  { %653 = vrot.lane.b32.xlu0 %v2417_v26, %s2312_s19 }
  0x61   :  { %763 = vrot.lane.b32.xlu1 %v353_v32, %s2313_s20 }
  0x63   :  { %761 = vrot.lane.b32.xlu0 %v352_v28, %s2313_s20 }
  0x65   :  { %767 = vrot.lane.b32.xlu1 %v2428_v30, %s2313_s20 }
  0x67   :  { %765 = vrot.lane.b32.xlu0 %v2417_v26, %s2313_s20 }
  0x69   :  { %847 = vrot.lane.b32.xlu1 %v353_v32, %s2314_s21 }
  0x6b   :  { %845 = vrot.lane.b32.xlu0 %v352_v28, %s2314_s21 }
  0x6d   :  { %851 = vrot.lane.b32.xlu1 %v2428_v30, %s2314_s21 }
  0x6f   :  { %849 = vrot.lane.b32.xlu0 %v2417_v26, %s2314_s21 }
  0x71   :  { %931 = vrot.lane.b32.xlu1 %v353_v32, %s2315_s22 }
  0x73   :  { %929 = vrot.lane.b32.xlu0 %v352_v28, %s2315_s22 }
  0x75   :  { %935 = vrot.lane.b32.xlu1 %v2428_v30, %s2315_s22 }
  0x77   :  { %933 = vrot.lane.b32.xlu0 %v2417_v26, %s2315_s22 }
  0x79   :  { %1015 = vrot.lane.b32.xlu1 %v353_v32, %s2316_s23 }
  0x7b   :  { %1013 = vrot.lane.b32.xlu0 %v352_v28, %s2316_s23  ;;  %v2534_v28 = vrot.slane %v442_v15, %v2490_v57 }
  0x7d   :  { %1019 = vrot.lane.b32.xlu1 %v2428_v30, %s2316_s23  ;;  %v526_v30 = vld [vmem:[#allocation9 + $0x2] ss:$8 sm:$0xf] }
  0x7e   :  { %v2542_v34 = vrot.slane %v526_v30, %v2484_v53  ;;  %v2547_v38 = vrot.slane %v526_v30, %v2486_v54 }
  0x7f   :  { %1017 = vrot.lane.b32.xlu0 %v2417_v26, %s2316_s23 }
  0xb3   :  { %v402_v47 = vpop.permute.xlu1 %401 }
  0xb4   :  { %v398_v48 = vpop.permute.xlu0 %397 }
  0xb7   :  { %v404_v55 = vpop.permute.xlu1 %403 }
  0xb8   :  { %v400_v58 = vpop.permute.xlu0 %399  ;;  %v405_v62 = vsel %vm367_vm0, %v402_v47, %v404_v55  ;;  %v408_v63 = vsel %vm367_vm0, %v404_v55, %v398_v48 }
  0xb9   :  { %v409_v2 = vmul.f32 %v408_v63, %v2494_v59  ;;  %v406_v3 = vsel %vm367_vm0, %v400_v58, %v402_v47  ;;  %v407_v4 = vsel %vm367_vm0, %v398_v48, %v400_v58  ;;  %v412_v6 = vmul.f32 %v405_v62, %v2500_v61  ;;  %v610_v58 = vld [vmem:[#allocation9 + $0x3] ss:$8 sm:$0xf] }
  0xba   :  { %v410_v7 = vmul.f32 %v407_v4, %v2497_v60  ;;  %v411_v8 = vmul.f32 %v406_v3, %v2507_v1  ;;  %v2554_v47 = vrot.slane %v526_v30, %v2488_v56  ;;  %v2557_v48 = vrot.slane %v526_v30, %v2490_v57 }
  0xbb   :  { %v484_v5 = vpop.permute.xlu1 %483  ;;  %v421_v9 = vpack.c.bf16 %v409_v2, %v409_v2  ;;  %v424_v10 = vpack.c.bf16 %v412_v6, %v412_v6  ;;  %v2567_v6 = vrot.slane %v610_v58, %v2484_v53 }
  0xbc   :  { %v422_v11 = vpack.c.bf16 %v410_v7, %v410_v7  ;;  %v423_v12 = vpack.c.bf16 %v411_v8, %v411_v8  ;;  %v482_v16 = vpop.permute.xlu0 %481  ;;  %v2570_v7 = vrot.slane %v610_v58, %v2486_v54 }
  0xbd   :  { %v429_v13 = vrot.slane %v421_v9, 4  ;;  %v432_v17 = vrot.slane %v424_v10, 4  ;;  %v491_v22 = vsel %vm451_vm1, %v482_v16, %v484_v5 }
  0xbe   :  { %v430_v18 = vrot.slane %v422_v11, 4  ;;  %v431_v19 = vrot.slane %v423_v12, 4  ;;  %v494_v25 = vmul.f32 %v491_v22, %v2522_v21 }
  0xbf   :  { %v488_v14 = vpop.permute.xlu1 %487  ;;  %437 = vst [vmem:[#allocation2] sm:$0xf0] %v429_v13  ;;  %440 = vst [vmem:[#allocation2 + $0x18] sm:$0xf0] %v432_v17 }
  0xc0   :  { %v492_v23 = vsel %vm451_vm1, %v488_v14, %v482_v16  ;;  %438 = vst [vmem:[#allocation2 + $0x8] sm:$0xf0] %v430_v18  ;;  %439 = vst [vmem:[#allocation2 + $0x10] sm:$0xf0] %v431_v19  ;;  %v486_v29 = vpop.permute.xlu0 %485  ;;  %v506_v35 = vpack.c.bf16 %v494_v25, %v494_v25  ;;  %v2579_v18 = vrot.slane %v610_v58, %v2488_v56 }
  0xc1   :  { %v493_v24 = vmul.f32 %v492_v23, %v2519_v20  ;;  %v489_v32 = vsel %vm451_vm1, %v486_v29, %v488_v14  ;;  %v490_v33 = vsel %vm451_vm1, %v484_v5, %v486_v29  ;;  %v2582_v19 = vrot.slane %v610_v58, %v2490_v57 }
  0xc2   :  { %v495_v36 = vmul.f32 %v490_v33, %v2531_v27  ;;  %v496_v37 = vmul.f32 %v489_v32, %v2534_v28  ;;  %v514_v40 = vrot.slane %v506_v35, 4 }
  0xc3   :  { %v568_v26 = vpop.permute.xlu1 %567  ;;  %v505_v31 = vpack.c.bf16 %v493_v24, %v493_v24 }
  0xc4   :  { %v507_v41 = vpack.c.bf16 %v495_v36, %v495_v36  ;;  %v508_v42 = vpack.c.bf16 %v496_v37, %v496_v37  ;;  %v566_v44 = vpop.permute.xlu0 %565  ;;  %522 = vst [vmem:[#allocation2 + $0x28] sm:$0xf0] %v514_v40 }
  0xc5   :  { %v513_v39 = vrot.slane %v505_v31, 4  ;;  %v575_v45 = vsel %vm535_vm2, %v566_v44, %v568_v26 }
  0xc6   :  { %v515_v49 = vrot.slane %v507_v41, 4  ;;  %v516_v50 = vrot.slane %v508_v42, 4  ;;  %v578_v55 = vmul.f32 %v575_v45, %v2547_v38 }
  0xc7   :  { %v572_v43 = vpop.permute.xlu1 %571  ;;  %521 = vst [vmem:[#allocation2 + $0x20] sm:$0xf0] %v513_v39 }
  0xc8   :  { %v576_v46 = vsel %vm535_vm2, %v572_v43, %v566_v44  ;;  %523 = vst [vmem:[#allocation2 + $0x30] sm:$0xf0] %v515_v49  ;;  %524 = vst [vmem:[#allocation2 + $0x38] sm:$0xf0] %v516_v50  ;;  %v590_v63 = vpack.c.bf16 %v578_v55, %v578_v55  ;;  %v570_v3 = vpop.permute.xlu0 %569 }
  0xc9   :  { %v577_v51 = vmul.f32 %v576_v46, %v2542_v34  ;;  %v573_v4 = vsel %vm535_vm2, %v570_v3, %v572_v43  ;;  %v574_v5 = vsel %vm535_vm2, %v568_v26, %v570_v3  ;;  %v722_v26 = vld [vmem:[#allocation9 + $0x5] ss:$8 sm:$0xf]  ;;  %v806_v3 = vld [vmem:[#allocation9 + $0x6] ss:$8 sm:$0xf] }
  0xca   :  { %v598_v9 = vrot.slane %v590_v63, 4  ;;  %v579_v10 = vmul.f32 %v574_v5, %v2554_v47  ;;  %v580_v11 = vmul.f32 %v573_v4, %v2557_v48  ;;  %v2592_v36 = vrot.slane %v722_v26, %v2484_v53 }
  0xcb   :  { %v589_v62 = vpack.c.bf16 %v577_v51, %v577_v51  ;;  %v652_v2 = vpop.permute.xlu1 %651  ;;  %v2595_v37 = vrot.slane %v722_v26, %v2490_v57  ;;  %v2604_v51 = vrot.slane %v722_v26, %v2486_v54  ;;  %v2607_v55 = vrot.slane %v722_v26, %v2488_v56 }
  0xcc   :  { %606 = vst [vmem:[#allocation2 + $0x48] sm:$0xf0] %v598_v9  ;;  %v591_v12 = vpack.c.bf16 %v579_v10, %v579_v10  ;;  %v592_v13 = vpack.c.bf16 %v580_v11, %v580_v11 }
  0xcd   :  { %v597_v8 = vrot.slane %v589_v62, 4  ;;  %v650_v15 = vpop.permute.xlu0 %649 }
  0xce   :  { %v659_v16 = vsel %vm619_vm3, %v650_v15, %v652_v2  ;;  %v599_v22 = vrot.slane %v591_v12, 4  ;;  %v600_v23 = vrot.slane %v592_v13, 4  ;;  %v2617_v12 = vrot.slane %v806_v3, %v2484_v53 }
  0xcf   :  { %605 = vst [vmem:[#allocation2 + $0x40] sm:$0xf0] %v597_v8  ;;  %v656_v14 = vpop.permute.xlu1 %655  ;;  %v662_v25 = vmul.f32 %v659_v16, %v2570_v7  ;;  %v2620_v13 = vrot.slane %v806_v3, %v2490_v57 }
  0xd0   :  { %v660_v17 = vsel %vm619_vm3, %v656_v14, %v650_v15  ;;  %607 = vst [vmem:[#allocation2 + $0x50] sm:$0xf0] %v599_v22  ;;  %608 = vst [vmem:[#allocation2 + $0x58] sm:$0xf0] %v600_v23 }
  0xd1   :  { %v661_v24 = vmul.f32 %v660_v17, %v2567_v6  ;;  %v674_v30 = vpack.c.bf16 %v662_v25, %v662_v25  ;;  %v654_v32 = vpop.permute.xlu0 %653 }
  0xd2   :  { %v657_v33 = vsel %vm619_vm3, %v654_v32, %v656_v14  ;;  %v658_v35 = vsel %vm619_vm3, %v652_v2, %v654_v32 }
  0xd3   :  { %v673_v29 = vpack.c.bf16 %v661_v24, %v661_v24  ;;  %v764_v31 = vpop.permute.xlu1 %763  ;;  %v682_v40 = vrot.slane %v674_v30, 4  ;;  %v663_v41 = vmul.f32 %v658_v35, %v2579_v18  ;;  %v664_v42 = vmul.f32 %v657_v33, %v2582_v19 }
  0xd4   :  { %v2629_v30 = vrot.slane %v806_v3, %v2486_v54 }
  0xd5   :  { %v681_v39 = vrot.slane %v673_v29, 4  ;;  %690 = vst [vmem:[#allocation2 + $0x68] sm:$0xf0] %v682_v40  ;;  %v675_v43 = vpack.c.bf16 %v663_v41, %v663_v41  ;;  %v676_v44 = vpack.c.bf16 %v664_v42, %v664_v42  ;;  %v762_v46 = vpop.permute.xlu0 %761  ;;  %v890_v40 = vld [vmem:[#allocation9 + $0x7] ss:$8 sm:$0xf] }
  0xd6   :  { %v771_v49 = vsel %vm731_vm4, %v762_v46, %v764_v31 }
  0xd7   :  { %689 = vst [vmem:[#allocation2 + $0x60] sm:$0xf0] %v681_v39  ;;  %v768_v45 = vpop.permute.xlu1 %767  ;;  %v683_v58 = vrot.slane %v675_v43, 4  ;;  %v684_v62 = vrot.slane %v676_v44, 4  ;;  %v773_v63 = vmul.f32 %v771_v49, %v2592_v36  ;;  %v2642_v49 = vrot.slane %v890_v40, %v2484_v53 }
  0xd8   :  { %v772_v50 = vsel %vm731_vm4, %v768_v45, %v762_v46 }
  0xd9   :  { %v776_v2 = vmul.f32 %v772_v50, %v2595_v37  ;;  %691 = vst [vmem:[#allocation2 + $0x70] sm:$0xf0] %v683_v58  ;;  %692 = vst [vmem:[#allocation2 + $0x78] sm:$0xf0] %v684_v62  ;;  %v785_v4 = vpack.c.bf16 %v773_v63, %v773_v63  ;;  %v766_v9 = vpop.permute.xlu0 %765  ;;  %v2645_v50 = vrot.slane %v890_v40, %v2490_v57 }
  0xda   :  { %v769_v10 = vsel %vm731_vm4, %v766_v9, %v768_v45  ;;  %v770_v11 = vsel %vm731_vm4, %v764_v31, %v766_v9  ;;  %v2632_v31 = vrot.slane %v806_v3, %v2488_v56 }
  0xdb   :  { %v788_v5 = vpack.c.bf16 %v776_v2, %v776_v2  ;;  %v848_v8 = vpop.permute.xlu1 %847  ;;  %v793_v14 = vrot.slane %v785_v4, 4  ;;  %v774_v16 = vmul.f32 %v770_v11, %v2604_v51  ;;  %v775_v17 = vmul.f32 %v769_v10, %v2607_v55 }
  0xdc   :  { %v2654_v11 = vrot.slane %v890_v40, %v2486_v54 }
  0xdd   :  { %v796_v15 = vrot.slane %v788_v5, 4  ;;  %801 = vst [vmem:[#allocation2 + $0xa0] sm:$0xf0] %v793_v14  ;;  %v786_v22 = vpack.c.bf16 %v774_v16, %v774_v16  ;;  %v787_v23 = vpack.c.bf16 %v775_v17, %v775_v17  ;;  %v846_v25 = vpop.permute.xlu0 %845  ;;  %v2657_v14 = vrot.slane %v890_v40, %v2488_v56 }
  0xde   :  { %v855_v26 = vsel %vm815_vm5, %v846_v25, %v848_v8 }
  0xdf   :  { %804 = vst [vmem:[#allocation2 + $0xb8] sm:$0xf0] %v796_v15  ;;  %v852_v24 = vpop.permute.xlu1 %851  ;;  %v794_v32 = vrot.slane %v786_v22, 4  ;;  %v795_v33 = vrot.slane %v787_v23, 4  ;;  %v857_v35 = vmul.f32 %v855_v26, %v2617_v12 }
  0xe0   :  { %v856_v29 = vsel %vm815_vm5, %v852_v24, %v846_v25  ;;  %v974_v23 = vld [vmem:[#allocation9 + $0x20] ss:$8 sm:$0xf] }
  0xe1   :  { %v860_v39 = vmul.f32 %v856_v29, %v2620_v13  ;;  %802 = vst [vmem:[#allocation2 + $0xa8] sm:$0xf0] %v794_v32  ;;  %803 = vst [vmem:[#allocation2 + $0xb0] sm:$0xf0] %v795_v33  ;;  %v869_v41 = vpack.c.bf16 %v857_v35, %v857_v35  ;;  %v850_v44 = vpop.permute.xlu0 %849  ;;  %v2667_v35 = vrot.slane %v974_v23, %v2484_v53 }
  0xe2   :  { %v853_v45 = vsel %vm815_vm5, %v850_v44, %v852_v24  ;;  %v854_v46 = vsel %vm815_vm5, %v848_v8, %v850_v44 }
  0xe3   :  { %v872_v42 = vpack.c.bf16 %v860_v39, %v860_v39  ;;  %v932_v43 = vpop.permute.xlu1 %931  ;;  %v877_v58 = vrot.slane %v869_v41, 4  ;;  %v858_v63 = vmul.f32 %v854_v46, %v2629_v30  ;;  %v859_v2 = vmul.f32 %v853_v45, %v2632_v31 }
  0xe4   :  { %v2670_v39 = vrot.slane %v974_v23, %v2490_v57 }
  0xe5   :  { %v880_v62 = vrot.slane %v872_v42, 4  ;;  %885 = vst [vmem:[#allocation2 + $0xc0] sm:$0xf0] %v877_v58  ;;  %v870_v3 = vpack.c.bf16 %v858_v63, %v858_v63  ;;  %v871_v4 = vpack.c.bf16 %v859_v2, %v859_v2  ;;  %v930_v9 = vpop.permute.xlu0 %929  ;;  %v2679_v2 = vrot.slane %v974_v23, %v2486_v54 }
  0xe6   :  { %v939_v8 = vsel %vm899_vm6, %v930_v9, %v932_v43 }
  0xe7   :  { %888 = vst [vmem:[#allocation2 + $0xd8] sm:$0xf0] %v880_v62  ;;  %v936_v5 = vpop.permute.xlu1 %935  ;;  %v878_v15 = vrot.slane %v870_v3, 4  ;;  %v879_v16 = vrot.slane %v871_v4, 4  ;;  %v941_v17 = vmul.f32 %v939_v8, %v2642_v49  ;;  %v2682_v3 = vrot.slane %v974_v23, %v2488_v56 }
  0xe8   :  { %v940_v10 = vsel %vm899_vm6, %v936_v5, %v930_v9 }
  0xe9   :  { %v944_v22 = vmul.f32 %v940_v10, %v2645_v50  ;;  %886 = vst [vmem:[#allocation2 + $0xc8] sm:$0xf0] %v878_v15  ;;  %887 = vst [vmem:[#allocation2 + $0xd0] sm:$0xf0] %v879_v16  ;;  %v953_v24 = vpack.c.bf16 %v941_v17, %v941_v17  ;;  %v934_v29 = vpop.permute.xlu0 %933 }
  0xea   :  { %v937_v32 = vsel %vm899_vm6, %v934_v29, %v936_v5  ;;  %v938_v33 = vsel %vm899_vm6, %v932_v43, %v934_v29 }
  0xeb   :  { %v956_v25 = vpack.c.bf16 %v944_v22, %v944_v22  ;;  %v1016_v26 = vpop.permute.xlu1 %1015  ;;  %v961_v40 = vrot.slane %v953_v24, 4  ;;  %v942_v42 = vmul.f32 %v938_v33, %v2654_v11  ;;  %v943_v44 = vmul.f32 %v937_v32, %v2657_v14 }
  0xed   :  { %v964_v41 = vrot.slane %v956_v25, 4  ;;  %969 = vst [vmem:[#allocation2 + $0xe0] sm:$0xf0] %v961_v40  ;;  %v954_v45 = vpack.c.bf16 %v942_v42, %v942_v42  ;;  %v955_v46 = vpack.c.bf16 %v943_v44, %v943_v44  ;;  %v1014_v62 = vpop.permute.xlu0 %1013 }
  0xee   :  { %v1023_v43 = vsel %vm983_vm7, %v1014_v62, %v1016_v26 }
  0xef   :  { %972 = vst [vmem:[#allocation2 + $0xf8] sm:$0xf0] %v964_v41  ;;  %v1020_v58 = vpop.permute.xlu1 %1019  ;;  %v962_v4 = vrot.slane %v954_v45, 4  ;;  %v963_v5 = vrot.slane %v955_v46, 4  ;;  %v1025_v9 = vmul.f32 %v1023_v43, %v2667_v35 }
  0xf0   :  { %v1024_v63 = vsel %vm983_vm7, %v1020_v58, %v1014_v62 }
  0xf1   :  { %v1028_v8 = vmul.f32 %v1024_v63, %v2670_v39  ;;  %970 = vst [vmem:[#allocation2 + $0xe8] sm:$0xf0] %v962_v4  ;;  %971 = vst [vmem:[#allocation2 + $0xf0] sm:$0xf0] %v963_v5  ;;  %v1037_v10 = vpack.c.bf16 %v1025_v9, %v1025_v9  ;;  %v1018_v16 = vpop.permute.xlu0 %1017 }
  0xf2   :  { %v1021_v17 = vsel %vm983_vm7, %v1018_v16, %v1020_v58  ;;  %v1022_v22 = vsel %vm983_vm7, %v1016_v26, %v1018_v16 }
  0xf3   :  { %v1040_v15 = vpack.c.bf16 %v1028_v8, %v1028_v8  ;;  %v1045_v24 = vrot.slane %v1037_v10, 4  ;;  %v1026_v25 = vmul.f32 %v1022_v22, %v2679_v2  ;;  %v1027_v29 = vmul.f32 %v1021_v17, %v2682_v3  ;;  %v2727_v8 = vld [vmem:[%s3058_s4] sm:$0xff] }
  0xf4   :  { %v2049_v10 = vcombine.high %v2727_v8, %v2727_v8 }
  0xf5   :  { %v1048_v23 = vrot.slane %v1040_v15, 4  ;;  %1053 = vst [vmem:[#allocation2 + $0x100] sm:$0xf0] %v1045_v24  ;;  %v1038_v32 = vpack.c.bf16 %v1026_v25, %v1026_v25  ;;  %v1039_v33 = vpack.c.bf16 %v1027_v29, %v1027_v29 }
  0xf6   :  { %2050 = vmatprep.mubr.msk.bf16.mxu0 %vm1100_vm8, %v2049_v10  ;;  %2051 = vmatprep.mubr.msk.bf16.mxu1 %vm1100_vm8, %v2049_v10 }
  0xf7   :  { %1056 = vst [vmem:[#allocation2 + $0x118] sm:$0xf0] %v1048_v23  ;;  %v1046_v40 = vrot.slane %v1038_v32, 4  ;;  %v1047_v41 = vrot.slane %v1039_v33, 4 }
  0xf9   :  { %1054 = vst [vmem:[#allocation2 + $0x108] sm:$0xf0] %v1046_v40  ;;  %1055 = vst [vmem:[#allocation2 + $0x110] sm:$0xf0] %v1047_v41 }
 0x12d   :  { %v304_v42 = vpop.f32.mrb[0].mxu0  ;;  %v345_v26 = vpop.f32.mrb[0].mxu1 }
 0x12e   :  { %v693_v44 = vpack.c.bf16 %v304_v42, %v304_v42  ;;  %357 = vrot.lane.b32.xlu0 %v304_v42, %s2310_s13  ;;  %v306_v45 = vpop.f32.mrb[1].mxu0  ;;  %v695_v62 = vpack.c.bf16 %v345_v26, %v345_v26  ;;  %v347_v43 = vpop.f32.mrb[1].mxu1 }
 0x12f   :  { %v694_v46 = vpack.c.bf16 %v306_v45, %v306_v45  ;;  %359 = vrot.lane.b32.xlu1 %v306_v45, %s2310_s13  ;;  %v308_v58 = vpop.f32.mrb[2].mxu0  ;;  %v696_v4 = vpack.c.bf16 %v347_v43, %v347_v43  ;;  %v349_v5 = vpop.f32.mrb[2].mxu1 }
 0x130   :  { %697 = vst [vmem:[#allocation2 + $0x80] sm:$0xf] %v693_v44  ;;  %v309_v63 = vpop.f32.mrb[3].mxu0  ;;  %699 = vst [vmem:[#allocation2 + $0x90] sm:$0xf] %v695_v62  ;;  %v350_v9 = vpop.f32.mrb[3].mxu1 }
 0x131   :  { %698 = vst [vmem:[#allocation2 + $0x88] sm:$0xf] %v694_v46  ;;  %700 = vst [vmem:[#allocation2 + $0x98] sm:$0xf] %v696_v4 }
 0x132   :  { %361 = vrot.lane.b32.xlu0 %v345_v26, %s2310_s13 }
 0x133   :  { %363 = vrot.lane.b32.xlu1 %v347_v43, %s2310_s13 }
 0x136   :  { %443 = vrot.lane.b32.xlu0 %v304_v42, %s2304_s24 }
 0x137   :  { %445 = vrot.lane.b32.xlu1 %v306_v45, %s2304_s24 }
 0x13a   :  { %447 = vrot.lane.b32.xlu0 %v345_v26, %s2304_s24 }
 0x13b   :  { %449 = vrot.lane.b32.xlu1 %v347_v43, %s2304_s24 }
 0x13e   :  { %527 = vrot.lane.b32.xlu0 %v304_v42, %s2311_s1 }
 0x13f   :  { %529 = vrot.lane.b32.xlu1 %v306_v45, %s2311_s1 }
 0x142   :  { %531 = vrot.lane.b32.xlu0 %v345_v26, %s2311_s1 }
 0x143   :  { %533 = vrot.lane.b32.xlu1 %v347_v43, %s2311_s1 }
 0x146   :  { %611 = vrot.lane.b32.xlu0 %v304_v42, %s2312_s19 }
 0x147   :  { %613 = vrot.lane.b32.xlu1 %v306_v45, %s2312_s19 }
 0x14a   :  { %615 = vrot.lane.b32.xlu0 %v345_v26, %s2312_s19 }
 0x14b   :  { %617 = vrot.lane.b32.xlu1 %v347_v43, %s2312_s19 }
 0x14e   :  { %723 = vrot.lane.b32.xlu0 %v304_v42, %s2313_s20 }
 0x14f   :  { %725 = vrot.lane.b32.xlu1 %v306_v45, %s2313_s20 }
 0x152   :  { %727 = vrot.lane.b32.xlu0 %v345_v26, %s2313_s20 }
 0x153   :  { %729 = vrot.lane.b32.xlu1 %v347_v43, %s2313_s20 }
 0x156   :  { %807 = vrot.lane.b32.xlu0 %v304_v42, %s2314_s21 }
 0x157   :  { %809 = vrot.lane.b32.xlu1 %v306_v45, %s2314_s21 }
 0x15a   :  { %811 = vrot.lane.b32.xlu0 %v345_v26, %s2314_s21 }
 0x15b   :  { %813 = vrot.lane.b32.xlu1 %v347_v43, %s2314_s21 }
 0x15e   :  { %891 = vrot.lane.b32.xlu0 %v304_v42, %s2315_s22 }
 0x15f   :  { %893 = vrot.lane.b32.xlu1 %v306_v45, %s2315_s22 }
 0x162   :  { %895 = vrot.lane.b32.xlu0 %v345_v26, %s2315_s22 }
 0x163   :  { %897 = vrot.lane.b32.xlu1 %v347_v43, %s2315_s22 }
 0x166   :  { %975 = vrot.lane.b32.xlu0 %v304_v42, %s2316_s23 }
 0x167   :  { %977 = vrot.lane.b32.xlu1 %v306_v45, %s2316_s23 }
 0x16a   :  { %979 = vrot.lane.b32.xlu0 %v345_v26, %s2316_s23 }
 0x16b   :  { %981 = vrot.lane.b32.xlu1 %v347_v43, %s2316_s23 }
 0x1a0   :  { %v358_v15 = vpop.permute.xlu0 %357 }
 0x1a1   :  { %v360_v16 = vpop.permute.xlu1 %359 }
 0x1a2   :  { %v370_v17 = vsel %vm367_vm0, %v358_v15, %v360_v16 }
 0x1a3   :  { %v394_v22 = vmul.f32 %v2497_v60, %v370_v17 }
 0x1a4   :  { %v362_v24 = vpop.permute.xlu0 %361 }
 0x1a5   :  { %v414_v23 = vpack.c.bf16 %v394_v22, %v394_v22  ;;  %v369_v25 = vsel %vm367_vm0, %v360_v16, %v362_v24  ;;  %v364_v29 = vpop.permute.xlu1 %363 }
 0x1a6   :  { %v395_v32 = vmul.f32 %v2507_v1, %v369_v25  ;;  %v368_v33 = vsel %vm367_vm0, %v362_v24, %v364_v29  ;;  %v371_v40 = vsel %vm367_vm0, %v364_v29, %v358_v15 }
 0x1a7   :  { %418 = vst [vmem:[#allocation2 + $0x8] sm:$0xf] %v414_v23  ;;  %v393_v41 = vmul.f32 %v2494_v59, %v371_v40  ;;  %v396_v42 = vmul.f32 %v2500_v61, %v368_v33 }
 0x1a8   :  { %v415_v60 = vpack.c.bf16 %v395_v32, %v395_v32  ;;  %v444_v44 = vpop.permute.xlu0 %443 }
 0x1a9   :  { %v413_v45 = vpack.c.bf16 %v393_v41, %v393_v41  ;;  %v416_v26 = vpack.c.bf16 %v396_v42, %v396_v42  ;;  %v446_v46 = vpop.permute.xlu1 %445 }
 0x1aa   :  { %419 = vst [vmem:[#allocation2 + $0x10] sm:$0xf] %v415_v60  ;;  %v454_v1 = vsel %vm451_vm1, %v444_v44, %v446_v46 }
 0x1ab   :  { %417 = vst [vmem:[#allocation2] sm:$0xf] %v413_v45  ;;  %420 = vst [vmem:[#allocation2 + $0x18] sm:$0xf] %v416_v26  ;;  %v478_v58 = vmul.f32 %v2522_v21, %v454_v1 }
 0x1ac   :  { %v448_v62 = vpop.permute.xlu0 %447 }
 0x1ad   :  { %v498_v43 = vpack.c.bf16 %v478_v58, %v478_v58  ;;  %v453_v59 = vsel %vm451_vm1, %v446_v46, %v448_v62  ;;  %v450_v63 = vpop.permute.xlu1 %449 }
 0x1ae   :  { %v479_v61 = vmul.f32 %v2531_v27, %v453_v59  ;;  %v452_v4 = vsel %vm451_vm1, %v448_v62, %v450_v63  ;;  %v455_v5 = vsel %vm451_vm1, %v450_v63, %v444_v44  ;;  %v1059_v9 = vld [vmem:[#allocation2 + $0x8] sm:$0xff] }
 0x1af   :  { %502 = vst [vmem:[#allocation2 + $0x28] sm:$0xf] %v498_v43  ;;  %v477_v10 = vmul.f32 %v2519_v20, %v455_v5  ;;  %v480_v21 = vmul.f32 %v2534_v28, %v452_v4  ;;  %1104 = vmatprep.subr.bf16.mxu0 %v1059_v9 }
 0x1b0   :  { %v499_v15 = vpack.c.bf16 %v479_v61, %v479_v61  ;;  %v528_v16 = vpop.permute.xlu0 %527 }
 0x1b1   :  { %v497_v17 = vpack.c.bf16 %v477_v10, %v477_v10  ;;  %v500_v22 = vpack.c.bf16 %v480_v21, %v480_v21  ;;  %v530_v24 = vpop.permute.xlu1 %529  ;;  %v1060_v20 = vld [vmem:[#allocation2 + $0x10] sm:$0xff] }
 0x1b2   :  { %503 = vst [vmem:[#allocation2 + $0x30] sm:$0xf] %v499_v15  ;;  %v538_v27 = vsel %vm535_vm2, %v528_v16, %v530_v24  ;;  %v1058_v23 = vld [vmem:[#allocation2] sm:$0xff]  ;;  %v1061_v25 = vld [vmem:[#allocation2 + $0x18] sm:$0xff] }
 0x1b3   :  { %501 = vst [vmem:[#allocation2 + $0x20] sm:$0xf] %v497_v17  ;;  %504 = vst [vmem:[#allocation2 + $0x38] sm:$0xf] %v500_v22  ;;  %v562_v29 = vmul.f32 %v2547_v38, %v538_v27  ;;  %1105 = vmatpush1.bf16.msra.mxu0 %v1058_v23  ;;  %1145 = vmatprep.subr.bf16.mxu1 %v1061_v25 }
 0x1b4   :  { %v532_v28 = vpop.permute.xlu0 %531  ;;  %1146 = vmatpush1.bf16.msra.mxu1 %v1060_v20 }
 0x1b5   :  { %v582_v32 = vpack.c.bf16 %v562_v29, %v562_v29  ;;  %v537_v33 = vsel %vm535_vm2, %v530_v24, %v532_v28  ;;  %v534_v40 = vpop.permute.xlu1 %533 }
 0x1b6   :  { %v563_v41 = vmul.f32 %v2554_v47, %v537_v33  ;;  %v536_v42 = vsel %vm535_vm2, %v532_v28, %v534_v40  ;;  %v539_v60 = vsel %vm535_vm2, %v534_v40, %v528_v16  ;;  %v1063_v44 = vld [vmem:[#allocation2 + $0x28] sm:$0xff] }
 0x1b7   :  { %586 = vst [vmem:[#allocation2 + $0x48] sm:$0xf] %v582_v32  ;;  %v561_v38 = vmul.f32 %v2542_v34, %v539_v60  ;;  %v564_v45 = vmul.f32 %v2557_v48, %v536_v42  ;;  %1106 = vmatprep.subr.bf16.mxu0 %v1063_v44 }
 0x1b8   :  { %v583_v26 = vpack.c.bf16 %v563_v41, %v563_v41  ;;  %v612_v46 = vpop.permute.xlu0 %611 }
 0x1b9   :  { %v581_v1 = vpack.c.bf16 %v561_v38, %v561_v38  ;;  %v584_v58 = vpack.c.bf16 %v564_v45, %v564_v45  ;;  %v614_v62 = vpop.permute.xlu1 %613  ;;  %v1064_v34 = vld [vmem:[#allocation2 + $0x30] sm:$0xff] }
 0x1ba   :  { %587 = vst [vmem:[#allocation2 + $0x50] sm:$0xf] %v583_v26  ;;  %v622_v47 = vsel %vm619_vm3, %v612_v46, %v614_v62  ;;  %v1062_v43 = vld [vmem:[#allocation2 + $0x20] sm:$0xff]  ;;  %v1065_v59 = vld [vmem:[#allocation2 + $0x38] sm:$0xff] }
 0x1bb   :  { %585 = vst [vmem:[#allocation2 + $0x40] sm:$0xf] %v581_v1  ;;  %588 = vst [vmem:[#allocation2 + $0x58] sm:$0xf] %v584_v58  ;;  %v646_v63 = vmul.f32 %v2570_v7, %v622_v47  ;;  %1107 = vmatpush1.bf16.msra.mxu0 %v1062_v43  ;;  %1147 = vmatprep.subr.bf16.mxu1 %v1065_v59  ;;  %v1077_v59 = vld [vmem:[#allocation2 + $0x98] sm:$0xff] }
 0x1bc   :  { %v616_v48 = vpop.permute.xlu0 %615  ;;  %1148 = vmatpush1.bf16.msra.mxu1 %v1064_v34 }
 0x1bd   :  { %v666_v61 = vpack.c.bf16 %v646_v63, %v646_v63  ;;  %v621_v4 = vsel %vm619_vm3, %v614_v62, %v616_v48  ;;  %v618_v5 = vpop.permute.xlu1 %617 }
 0x1be   :  { %v647_v9 = vmul.f32 %v2579_v18, %v621_v4  ;;  %v620_v10 = vsel %vm619_vm3, %v616_v48, %v618_v5  ;;  %v623_v21 = vsel %vm619_vm3, %v618_v5, %v612_v46  ;;  %v1067_v15 = vld [vmem:[#allocation2 + $0x48] sm:$0xff]  ;;  %v1074_v5 = vld [vmem:[#allocation2 + $0x80] sm:$0xff] }
 0x1bf   :  { %670 = vst [vmem:[#allocation2 + $0x68] sm:$0xf] %v666_v61  ;;  %v645_v7 = vmul.f32 %v2567_v6, %v623_v21  ;;  %v648_v16 = vmul.f32 %v2582_v19, %v620_v10  ;;  %1108 = vmatprep.subr.bf16.mxu0 %v1067_v15  ;;  %v1076_v21 = vld [vmem:[#allocation2 + $0x90] sm:$0xff] }
 0x1c0   :  { %v667_v17 = vpack.c.bf16 %v647_v9, %v647_v9  ;;  %v724_v22 = vpop.permute.xlu0 %723 }
 0x1c1   :  { %v665_v24 = vpack.c.bf16 %v645_v7, %v645_v7  ;;  %v668_v27 = vpack.c.bf16 %v648_v16, %v648_v16  ;;  %v726_v23 = vpop.permute.xlu1 %725  ;;  %v1068_v6 = vld [vmem:[#allocation2 + $0x50] sm:$0xff] }
 0x1c2   :  { %671 = vst [vmem:[#allocation2 + $0x70] sm:$0xf] %v667_v17  ;;  %v734_v18 = vsel %vm731_vm4, %v724_v22, %v726_v23  ;;  %v1066_v25 = vld [vmem:[#allocation2 + $0x40] sm:$0xff]  ;;  %v1069_v29 = vld [vmem:[#allocation2 + $0x58] sm:$0xff] }
 0x1c3   :  { %669 = vst [vmem:[#allocation2 + $0x60] sm:$0xf] %v665_v24  ;;  %672 = vst [vmem:[#allocation2 + $0x78] sm:$0xf] %v668_v27  ;;  %v757_v20 = vmul.f32 %v2592_v36, %v734_v18  ;;  %1109 = vmatpush1.bf16.msra.mxu0 %v1066_v25  ;;  %1149 = vmatprep.subr.bf16.mxu1 %v1069_v29 }
 0x1c4   :  { %v728_v19 = vpop.permute.xlu0 %727  ;;  %1150 = vmatpush1.bf16.msra.mxu1 %v1068_v6 }
 0x1c5   :  { %v777_v28 = vpack.c.bf16 %v757_v20, %v757_v20  ;;  %v733_v32 = vsel %vm731_vm4, %v726_v23, %v728_v19  ;;  %v730_v33 = vpop.permute.xlu1 %729 }
 0x1c6   :  { %v758_v40 = vmul.f32 %v2604_v51, %v733_v32  ;;  %v732_v41 = vsel %vm731_vm4, %v728_v19, %v730_v33  ;;  %v735_v42 = vsel %vm731_vm4, %v730_v33, %v724_v22  ;;  %v1071_v60 = vld [vmem:[#allocation2 + $0x68] sm:$0xff] }
 0x1c7   :  { %781 = vst [vmem:[#allocation2 + $0xa0] sm:$0xf] %v777_v28  ;;  %v759_v36 = vmul.f32 %v2607_v55, %v732_v41  ;;  %v760_v44 = vmul.f32 %v2595_v37, %v735_v42  ;;  %1110 = vmatprep.subr.bf16.mxu0 %v1071_v60  ;;  %v1075_v55 = vld [vmem:[#allocation2 + $0x88] sm:$0xff] }
 0x1c8   :  { %v778_v38 = vpack.c.bf16 %v758_v40, %v758_v40  ;;  %v808_v45 = vpop.permute.xlu0 %807 }
 0x1c9   :  { %v779_v26 = vpack.c.bf16 %v759_v36, %v759_v36  ;;  %v780_v46 = vpack.c.bf16 %v760_v44, %v760_v44  ;;  %v810_v1 = vpop.permute.xlu1 %809  ;;  %v1072_v37 = vld [vmem:[#allocation2 + $0x70] sm:$0xff] }
 0x1ca   :  { %782 = vst [vmem:[#allocation2 + $0xa8] sm:$0xf] %v778_v38  ;;  %v818_v51 = vsel %vm815_vm5, %v808_v45, %v810_v1  ;;  %v1070_v58 = vld [vmem:[#allocation2 + $0x60] sm:$0xff]  ;;  %v1073_v62 = vld [vmem:[#allocation2 + $0x78] sm:$0xff] }
 0x1cb   :  { %783 = vst [vmem:[#allocation2 + $0xb0] sm:$0xf] %v779_v26  ;;  %784 = vst [vmem:[#allocation2 + $0xb8] sm:$0xf] %v780_v46  ;;  %v841_v47 = vmul.f32 %v2617_v12, %v818_v51  ;;  %1111 = vmatpush1.bf16.msra.mxu0 %v1070_v58  ;;  %1151 = vmatprep.subr.bf16.mxu1 %v1073_v62 }
 0x1cc   :  { %v812_v43 = vpop.permute.xlu0 %811  ;;  %1112 = vmatprep.subr.bf16.mxu0 %v1075_v55  ;;  %1152 = vmatpush1.bf16.msra.mxu1 %v1072_v37 }
 0x1cd   :  { %v861_v63 = vpack.c.bf16 %v841_v47, %v841_v47  ;;  %v817_v34 = vsel %vm815_vm5, %v810_v1, %v812_v43  ;;  %1153 = vmatprep.subr.bf16.mxu1 %v1077_v59  ;;  %v814_v48 = vpop.permute.xlu1 %813 }
 0x1ce   :  { %v842_v61 = vmul.f32 %v2629_v30, %v817_v34  ;;  %v816_v4 = vsel %vm815_vm5, %v812_v43, %v814_v48  ;;  %v819_v12 = vsel %vm815_vm5, %v814_v48, %v808_v45  ;;  %v1078_v27 = vld [vmem:[#allocation2 + $0xa0] sm:$0xff] }
 0x1cf   :  { %865 = vst [vmem:[#allocation2 + $0xc0] sm:$0xf] %v861_v63  ;;  %v843_v9 = vmul.f32 %v2632_v31, %v816_v4  ;;  %v844_v10 = vmul.f32 %v2620_v13, %v819_v12  ;;  %1113 = vmatpush1.bf16.msra.mxu0 %v1074_v5 }
 0x1d0   :  { %v862_v15 = vpack.c.bf16 %v842_v61, %v842_v61  ;;  %v892_v7 = vpop.permute.xlu0 %891  ;;  %1154 = vmatpush1.bf16.msra.mxu1 %v1076_v21 }
 0x1d1   :  { %v863_v16 = vpack.c.bf16 %v843_v9, %v843_v9  ;;  %v864_v17 = vpack.c.bf16 %v844_v10, %v844_v10  ;;  %v894_v30 = vpop.permute.xlu1 %893  ;;  %v1079_v22 = vld [vmem:[#allocation2 + $0xa8] sm:$0xff] }
 0x1d2   :  { %866 = vst [vmem:[#allocation2 + $0xc8] sm:$0xf] %v862_v15  ;;  %v902_v24 = vsel %vm899_vm6, %v892_v7, %v894_v30  ;;  %1114 = vmatprep.subr.bf16.mxu0 %v1079_v22  ;;  %v1081_v23 = vld [vmem:[#allocation2 + $0xb8] sm:$0xff]  ;;  %v1080_v18 = vld [vmem:[#allocation2 + $0xb0] sm:$0xff] }
 0x1d3   :  { %867 = vst [vmem:[#allocation2 + $0xd0] sm:$0xf] %v863_v16  ;;  %868 = vst [vmem:[#allocation2 + $0xd8] sm:$0xf] %v864_v17  ;;  %v925_v13 = vmul.f32 %v2642_v49, %v902_v24  ;;  %1115 = vmatpush1.bf16.msra.mxu0 %v1078_v27  ;;  %1155 = vmatprep.subr.bf16.mxu1 %v1081_v23 }
 0x1d4   :  { %v896_v31 = vpop.permute.xlu0 %895  ;;  %1156 = vmatpush1.bf16.msra.mxu1 %v1080_v18 }
 0x1d5   :  { %v945_v25 = vpack.c.bf16 %v925_v13, %v925_v13  ;;  %v901_v29 = vsel %vm899_vm6, %v894_v30, %v896_v31  ;;  %v898_v20 = vpop.permute.xlu1 %897 }
 0x1d6   :  { %v926_v6 = vmul.f32 %v2654_v11, %v901_v29  ;;  %v900_v19 = vsel %vm899_vm6, %v896_v31, %v898_v20  ;;  %v903_v28 = vsel %vm899_vm6, %v898_v20, %v892_v7  ;;  %v1082_v44 = vld [vmem:[#allocation2 + $0xc0] sm:$0xff] }
 0x1d7   :  { %949 = vst [vmem:[#allocation2 + $0xe0] sm:$0xf] %v945_v25  ;;  %v927_v49 = vmul.f32 %v2657_v14, %v900_v19  ;;  %v928_v32 = vmul.f32 %v2645_v50, %v903_v28 }
 0x1d8   :  { %v946_v33 = vpack.c.bf16 %v926_v6, %v926_v6  ;;  %v976_v40 = vpop.permute.xlu0 %975 }
 0x1d9   :  { %v947_v41 = vpack.c.bf16 %v927_v49, %v927_v49  ;;  %v948_v42 = vpack.c.bf16 %v928_v32, %v928_v32  ;;  %v978_v60 = vpop.permute.xlu1 %977  ;;  %v1083_v36 = vld [vmem:[#allocation2 + $0xc8] sm:$0xff] }
 0x1da   :  { %950 = vst [vmem:[#allocation2 + $0xe8] sm:$0xf] %v946_v33  ;;  %v986_v11 = vsel %vm983_vm7, %v976_v40, %v978_v60  ;;  %1116 = vmatprep.subr.bf16.mxu0 %v1083_v36  ;;  %v1085_v38 = vld [vmem:[#allocation2 + $0xd8] sm:$0xff]  ;;  %v1084_v45 = vld [vmem:[#allocation2 + $0xd0] sm:$0xff] }
 0x1db   :  { %951 = vst [vmem:[#allocation2 + $0xf0] sm:$0xf] %v947_v41  ;;  %952 = vst [vmem:[#allocation2 + $0xf8] sm:$0xf] %v948_v42  ;;  %v1009_v14 = vmul.f32 %v2667_v35, %v986_v11  ;;  %1117 = vmatpush1.bf16.msra.mxu0 %v1082_v44  ;;  %1157 = vmatprep.subr.bf16.mxu1 %v1085_v38  ;;  %v1186_v42 = vld [vmem:[%s3059_s5] sm:$0xff] }
 0x1dc   :  { %v980_v50 = vpop.permute.xlu0 %979  ;;  %1158 = vmatpush1.bf16.msra.mxu1 %v1084_v45  ;;  %v1187_v11 = vld [vmem:[%s3060_s6] sm:$0xff] }
 0x1dd   :  { %v1029_v26 = vpack.c.bf16 %v1009_v14, %v1009_v14  ;;  %v985_v46 = vsel %vm983_vm7, %v978_v60, %v980_v50  ;;  %v982_v1 = vpop.permute.xlu1 %981 }
 0x1de   :  { %v1010_v51 = vmul.f32 %v2679_v2, %v985_v46  ;;  %v984_v58 = vsel %vm983_vm7, %v980_v50, %v982_v1  ;;  %v987_v62 = vsel %vm983_vm7, %v982_v1, %v976_v40  ;;  %v1086_v63 = vld [vmem:[#allocation2 + $0xe0] sm:$0xff] }
 0x1df   :  { %1033 = vst [vmem:[#allocation2 + $0x100] sm:$0xf] %v1029_v26  ;;  %v1011_v35 = vmul.f32 %v2682_v3, %v984_v58  ;;  %v1012_v47 = vmul.f32 %v2670_v39, %v987_v62  ;;  %v2048_v39 = vcombine.low %v2727_v8, %v2727_v8 }
 0x1e0   :  { %v1030_v55 = vpack.c.bf16 %v1010_v51, %v1010_v51 }
 0x1e1   :  { %v1031_v37 = vpack.c.bf16 %v1011_v35, %v1011_v35  ;;  %v1032_v43 = vpack.c.bf16 %v1012_v47, %v1012_v47  ;;  %v1087_v59 = vld [vmem:[#allocation2 + $0xe8] sm:$0xff] }
 0x1e2   :  { %1034 = vst [vmem:[#allocation2 + $0x108] sm:$0xf] %v1030_v55  ;;  %1118 = vmatprep.subr.bf16.mxu0 %v1087_v59  ;;  %v1089_v34 = vld [vmem:[#allocation2 + $0xf8] sm:$0xff]  ;;  %v1088_v2 = vld [vmem:[#allocation2 + $0xf0] sm:$0xff] }
 0x1e3   :  { %1035 = vst [vmem:[#allocation2 + $0x110] sm:$0xf] %v1031_v37  ;;  %1036 = vst [vmem:[#allocation2 + $0x118] sm:$0xf] %v1032_v43  ;;  %1119 = vmatpush1.bf16.msra.mxu0 %v1086_v63  ;;  %1159 = vmatprep.subr.bf16.mxu1 %v1089_v34 }
 0x1e4   :  { %1160 = vmatpush1.bf16.msra.mxu1 %v1088_v2 }
 0x1e6   :  { %v1090_v61 = vld [vmem:[#allocation2 + $0x100] sm:$0xff] }
 0x1e9   :  { %v1091_v48 = vld [vmem:[#allocation2 + $0x108] sm:$0xff] }
 0x1ea   :  { %1120 = vmatprep.subr.bf16.mxu0 %v1091_v48  ;;  %v1093_v3 = vld [vmem:[#allocation2 + $0x118] sm:$0xff]  ;;  %v1092_v4 = vld [vmem:[#allocation2 + $0x110] sm:$0xff] }
 0x1eb   :  { %1121 = vmatpush1.bf16.msra.mxu0 %v1090_v61  ;;  %1161 = vmatprep.subr.bf16.mxu1 %v1093_v3 }
 0x1ec   :  { %1162 = vmatpush1.bf16.msra.mxu1 %v1092_v4 }
 0x1ee   :  { %1137 = vmatmul.mubr.bf16.vlgmr.msra.gmra.mrb[4].mxu0 %v2048_v39 }
 0x1ef   :  { %1178 = vmatmul.mubr.bf16.vlgmr.msra.gmra.mrb[4].mxu1 %v2048_v39  ;;  %1878 = vmatprep.mubr.bf16.mxu0 %v2309_v0 }
 0x1f0   :  { %1919 = vmatprep.mubr.bf16.mxu1 %v2309_v0 }
 0x2c1   :  { %v1138_v12 = vpop.f32.mrb[4].mxu0 }
 0x2c2   :  { %v1140_v5 = vpop.f32.mrb[5].mxu0  ;;  %v1179_v9 = vpop.f32.mrb[4].mxu1  ;;  %v1192_v10 = vmul.f32 %v1138_v12, %v1138_v12 }
 0x2c3   :  { %v1142_v21 = vpop.f32.mrb[6].mxu0  ;;  %v1188_v15 = vadd.f32 %v1140_v5, %v1138_v12  ;;  %v1181_v7 = vpop.f32.mrb[5].mxu1  ;;  %v1193_v16 = vmul.f32 %v1140_v5, %v1140_v5  ;;  %v1225_v17 = vmul.f32 %v1179_v9, %v1179_v9 }
 0x2c4   :  { %v1143_v30 = vpop.f32.mrb[7].mxu0  ;;  %v1183_v8 = vpop.f32.mrb[6].mxu1  ;;  %v1221_v22 = vadd.f32 %v1181_v7, %v1179_v9  ;;  %v1226_v24 = vmul.f32 %v1181_v7, %v1181_v7  ;;  %v1266_v21 = vld [vmem:[#allocation9] ss:$8 sm:$0xf] }
 0x2c5   :  { %1189 = vadd.xlane.f32.xlu0 %v1188_v15  ;;  %v1194_v27 = vadd.f32 %v1193_v16, %v1192_v10  ;;  %v1184_v23 = vpop.f32.mrb[7].mxu1  ;;  %v1322_v15 = vld [vmem:[#allocation9 + $0x1] ss:$8 sm:$0xf] }
 0x2c6   :  { %1222 = vadd.xlane.f32.xlu1 %v1221_v22  ;;  %v1227_v18 = vadd.f32 %v1226_v24, %v1225_v17  ;;  %v1275_v17 = vrot.slane %v1266_v21, %v2486_v54  ;;  %v1331_v30 = vrot.slane %v1322_v15, %v2486_v54  ;;  %v1271_v22 = vrot.slane %v1266_v21, %v2484_v53 }
 0x2c7   :  { %v1283_v23 = vrot.slane %v1266_v21, %v2490_v57 }
 0x2c9   :  { %1195 = vadd.xlane.f32.xlu0 %v1194_v27 }
 0x2cd   :  { %1228 = vadd.xlane.f32.xlu0 %v1227_v18  ;;  %v1335_v18 = vrot.slane %v1322_v15, %v2488_v56 }
 0x352   :  { %v1190_v0 = vpop.xlane.xlu0 %1189 }
 0x353   :  { %v1191_v13 = vmul.f32 0.00390625, %v1190_v0  ;;  %v1223_v31 = vpop.xlane.xlu1 %1222 }
 0x354   :  { %v1224_v25 = vmul.f32 0.00390625, %v1223_v31 }
 0x355   :  { %v1198_v20 = vmul.f32 %v1191_v13, %v1191_v13 }
 0x356   :  { %v1196_v29 = vpop.xlane.xlu0 %1195  ;;  %v1231_v28 = vmul.f32 %v1224_v25, %v1224_v25 }
 0x357   :  { %v1197_v6 = vmul.f32 0.00390625, %v1196_v29 }
 0x359   :  { %v1199_v19 = vsub.f32 %v1197_v6, %v1198_v20  ;;  %v1339_v20 = vrot.slane %v1322_v15, %v2490_v57  ;;  %v1279_v6 = vrot.slane %v1266_v21, %v2488_v56 }
 0x35a   :  { %v1229_v49 = vpop.xlane.xlu0 %1228 }
 0x35b   :  { %v1200_v32 = vadd.f32 1e-05, %v1199_v19  ;;  %v1230_v33 = vmul.f32 0.00390625, %v1229_v49 }
 0x35d   :  { %2200 = vrsqrt.f32 %v1200_v32  ;;  %v1232_v40 = vsub.f32 %v1230_v33, %v1231_v28 }
 0x35f   :  { %v1233_v41 = vadd.f32 1e-05, %v1232_v40 }
 0x361   :  { %2202 = vrsqrt.f32 %v1233_v41 }
 0x367   :  { %v2201_v60 = vpop.eup %2200 }
 0x368   :  { %v1202_v36 = vmul.f32 %v2201_v60, %v1186_v42 }
 0x36a   :  { %1207 = vperm.xlu1 %2148, %v1202_v36   ;;  %v1203_v44 = vmul.f32 %v1202_v36, %v1191_v13  ;;  %v1327_v13 = vrot.slane %v1322_v15, %v2484_v53 }
 0x36b   :  { %v2203_v38 = vpop.eup %2202 }
 0x36c   :  { %v1204_v45 = vsub.f32 %v1187_v11, %v1203_v44  ;;  %v1235_v14 = vmul.f32 %v2203_v38, %v1186_v42 }
 0x36e   :  { %1214 = vperm.xlu1 %2148, %v1204_v45   ;;  %1240 = vperm.xlu0 %2149, %v1235_v14   ;;  %v1236_v50 = vmul.f32 %v1235_v14, %v1224_v25 }
 0x370   :  { %v1237_v26 = vsub.f32 %v1187_v11, %v1236_v50 }
 0x372   :  { %1247 = vperm.xlu1 %2148, %v1237_v26  }
 0x3e9   :  { %v1208_v46 = vpop.permute.xlu1 %1207 }
 0x3ea   :  { %v1210_v1 = vmul.f32 %v1208_v46, %v1138_v12  ;;  %v1211_v62 = vmul.f32 %v1208_v46, %v1140_v5 }
 0x3ed   :  { %v1215_v51 = vpop.permute.xlu1 %1214  ;;  %v1241_v58 = vpop.permute.xlu0 %1240 }
 0x3ee   :  { %v1217_v35 = vadd.f32 %v1215_v51, %v1210_v1  ;;  %v1218_v47 = vadd.f32 %v1215_v51, %v1211_v62  ;;  %v1243_v37 = vmul.f32 %v1241_v58, %v1179_v9  ;;  %v1244_v2 = vmul.f32 %v1241_v58, %v1181_v7  ;;  %v1378_v1 = vld [vmem:[#allocation9 + $0x2] ss:$8 sm:$0xf]  ;;  %v1434_v51 = vld [vmem:[#allocation9 + $0x3] ss:$8 sm:$0xf] }
 0x3f0   :  { %v2837_v55 = vmax.f32 %v1217_v35, 0.0  ;;  %v2841_v63 = vmax.f32 %v1218_v47, 0.0  ;;  %v1387_v35 = vrot.slane %v1378_v1, %v2486_v54  ;;  %v1443_v47 = vrot.slane %v1434_v51, %v2486_v54 }
 0x3f1   :  { %v1248_v43 = vpop.permute.xlu1 %1247 }
 0x3f2   :  { %v1250_v59 = vadd.f32 %v1248_v43, %v1243_v37  ;;  %1254 = vrot.lane.b32.xlu1 %v2837_v55, %s2310_s13  ;;  %v1251_v48 = vadd.f32 %v1248_v43, %v1244_v2  ;;  %v1383_v43 = vrot.slane %v1378_v1, %v2484_v53  ;;  %v1395_v2 = vrot.slane %v1378_v1, %v2490_v57 }
 0x3f4   :  { %v2843_v34 = vmax.f32 %v1250_v59, 0.0  ;;  %v2853_v61 = vmax.f32 %v1251_v48, 0.0  ;;  %v1447_v48 = vrot.slane %v1434_v51, %v2488_v56 }
 0x3f6   :  { %1256 = vrot.lane.b32.xlu1 %v2841_v63, %s2310_s13  ;;  %1314 = vrot.lane.b32.xlu0 %v2843_v34, %s2304_s24 }
 0x3fa   :  { %1366 = vrot.lane.b32.xlu0 %v2837_v55, %s2311_s1  ;;  %1258 = vrot.lane.b32.xlu1 %v2843_v34, %s2310_s13 }
 0x3fe   :  { %1370 = vrot.lane.b32.xlu0 %v2843_v34, %s2311_s1  ;;  %1260 = vrot.lane.b32.xlu1 %v2853_v61, %s2310_s13 }
 0x402   :  { %1422 = vrot.lane.b32.xlu0 %v2837_v55, %s2312_s19  ;;  %1310 = vrot.lane.b32.xlu1 %v2837_v55, %s2304_s24 }
 0x406   :  { %1426 = vrot.lane.b32.xlu0 %v2843_v34, %s2312_s19  ;;  %1312 = vrot.lane.b32.xlu1 %v2841_v63, %s2304_s24 }
 0x40a   :  { %1496 = vrot.lane.b32.xlu0 %v2837_v55, %s2313_s20  ;;  %1316 = vrot.lane.b32.xlu1 %v2853_v61, %s2304_s24 }
 0x40e   :  { %1500 = vrot.lane.b32.xlu0 %v2843_v34, %s2313_s20  ;;  %1368 = vrot.lane.b32.xlu1 %v2841_v63, %s2311_s1 }
 0x412   :  { %1552 = vrot.lane.b32.xlu0 %v2837_v55, %s2314_s21  ;;  %1372 = vrot.lane.b32.xlu1 %v2853_v61, %s2311_s1 }
 0x416   :  { %1556 = vrot.lane.b32.xlu0 %v2843_v34, %s2314_s21  ;;  %1424 = vrot.lane.b32.xlu1 %v2841_v63, %s2312_s19 }
 0x41a   :  { %1608 = vrot.lane.b32.xlu0 %v2837_v55, %s2315_s22  ;;  %1428 = vrot.lane.b32.xlu1 %v2853_v61, %s2312_s19 }
 0x41e   :  { %1612 = vrot.lane.b32.xlu0 %v2843_v34, %s2315_s22  ;;  %1498 = vrot.lane.b32.xlu1 %v2841_v63, %s2313_s20 }
 0x422   :  { %1664 = vrot.lane.b32.xlu0 %v2837_v55, %s2316_s23  ;;  %1502 = vrot.lane.b32.xlu1 %v2853_v61, %s2313_s20 }
 0x426   :  { %1668 = vrot.lane.b32.xlu0 %v2843_v34, %s2316_s23  ;;  %1554 = vrot.lane.b32.xlu1 %v2841_v63, %s2314_s21 }
 0x42a   :  { %1558 = vrot.lane.b32.xlu1 %v2853_v61, %s2314_s21 }
 0x42e   :  { %1610 = vrot.lane.b32.xlu1 %v2841_v63, %s2315_s22 }
 0x432   :  { %1614 = vrot.lane.b32.xlu1 %v2853_v61, %s2315_s22 }
 0x436   :  { %1666 = vrot.lane.b32.xlu1 %v2841_v63, %s2316_s23 }
 0x43a   :  { %1670 = vrot.lane.b32.xlu1 %v2853_v61, %s2316_s23 }
 0x464   :  { %v1255_v3 = vpop.permute.xlu1 %1254 }
 0x468   :  { %v1315_v4 = vpop.permute.xlu0 %1314  ;;  %v1257_v39 = vpop.permute.xlu1 %1256 }
 0x469   :  { %v1264_v8 = vsel %vm367_vm0, %v1255_v3, %v1257_v39 }
 0x46a   :  { %v1289_v31 = vmul.f32 %v1275_v17, %v1264_v8  ;;  %v1391_v17 = vrot.slane %v1378_v1, %v2488_v56 }
 0x46c   :  { %v2909_v12 = vpop.permute.xlu0 %1366  ;;  %v1259_v5 = vpop.permute.xlu1 %1258 }
 0x46d   :  { %v1263_v49 = vsel %vm367_vm0, %v1257_v39, %v1259_v5  ;;  %v1508_v39 = vld [vmem:[#allocation9 + $0x5] ss:$8 sm:$0xf] }
 0x46e   :  { %v1290_v45 = vmul.f32 %v1279_v6, %v1263_v49 }
 0x470   :  { %v2911_v9 = vpop.permute.xlu0 %1370  ;;  %v1261_v10 = vpop.permute.xlu1 %1260 }
 0x471   :  { %v1262_v19 = vsel %vm367_vm0, %v1259_v5, %v1261_v10  ;;  %v1265_v28 = vsel %vm367_vm0, %v1261_v10, %v1255_v3 }
 0x472   :  { %v1288_v60 = vmul.f32 %v1271_v22, %v1265_v28  ;;  %v1291_v36 = vmul.f32 %v1283_v23, %v1262_v19 }
 0x474   :  { %v2913_v7 = vpop.permute.xlu0 %1422  ;;  %v1311_v16 = vpop.permute.xlu1 %1310 }
 0x478   :  { %v1427_v24 = vpop.permute.xlu0 %1426  ;;  %v1313_v27 = vpop.permute.xlu1 %1312 }
 0x479   :  { %v1320_v0 = vsel %vm451_vm1, %v1311_v16, %v1313_v27  ;;  %v1319_v25 = vsel %vm451_vm1, %v1313_v27, %v1315_v4 }
 0x47a   :  { %v1345_v29 = vmul.f32 %v1331_v30, %v1320_v0  ;;  %v1346_v40 = vmul.f32 %v1335_v18, %v1319_v25  ;;  %v1513_v18 = vrot.slane %v1508_v39, %v2484_v53  ;;  %v1517_v25 = vrot.slane %v1508_v39, %v2486_v54 }
 0x47c   :  { %v1317_v32 = vpop.permute.xlu1 %1316  ;;  %v2113_v33 = vpack.c.bf16 %v1345_v29, %v1289_v31  ;;  %v2939_v11 = vpop.permute.xlu0 %1496  ;;  %v2114_v46 = vpack.c.bf16 %v1346_v40, %v1290_v45  ;;  %v1521_v40 = vrot.slane %v1508_v39, %v2488_v56 }
 0x47d   :  { %v1318_v41 = vsel %vm451_vm1, %v1315_v4, %v1317_v32  ;;  %v1321_v42 = vsel %vm451_vm1, %v1317_v32, %v1311_v16  ;;  %v1439_v4 = vrot.slane %v1434_v51, %v2484_v53  ;;  %v1451_v16 = vrot.slane %v1434_v51, %v2490_v57 }
 0x47e   :  { %v1344_v44 = vmul.f32 %v1327_v13, %v1321_v42  ;;  %v1347_v38 = vmul.f32 %v1339_v20, %v1318_v41  ;;  %1846 = vmatprep.subr.bf16.mxu0 %v2113_v33 }
 0x480   :  { %v2112_v14 = vpack.c.bf16 %v1344_v44, %v1288_v60  ;;  %v1369_v50 = vpop.permute.xlu1 %1368  ;;  %v2115_v26 = vpack.c.bf16 %v1347_v38, %v1291_v36  ;;  %v1501_v58 = vpop.permute.xlu0 %1500  ;;  %v1525_v60 = vrot.slane %v1508_v39, %v2490_v57 }
 0x481   :  { %v1376_v37 = vsel %vm535_vm2, %v2909_v12, %v1369_v50  ;;  %v1375_v22 = vsel %vm535_vm2, %v1369_v50, %v2911_v9 }
 0x482   :  { %1847 = vmatpush1.bf16.msra.mxu0 %v2112_v14  ;;  %1887 = vmatprep.subr.bf16.mxu1 %v2115_v26  ;;  %v1401_v5 = vmul.f32 %v1387_v35, %v1376_v37 }
 0x483   :  { %1888 = vmatpush1.bf16.msra.mxu1 %v2114_v46 }
 0x484   :  { %v1373_v62 = vpop.permute.xlu1 %1372  ;;  %v2953_v10 = vpop.permute.xlu0 %1552 }
 0x485   :  { %v1374_v30 = vsel %vm535_vm2, %v2911_v9, %v1373_v62  ;;  %v1377_v8 = vsel %vm535_vm2, %v1373_v62, %v2909_v12  ;;  %v1402_v9 = vmul.f32 %v1391_v17, %v1375_v22  ;;  %v1564_v62 = vld [vmem:[#allocation9 + $0x6] ss:$8 sm:$0xf] }
 0x486   :  { %v1400_v29 = vmul.f32 %v1383_v43, %v1377_v8  ;;  %v1403_v12 = vmul.f32 %v1395_v2, %v1374_v30  ;;  %v1581_v2 = vrot.slane %v1564_v62, %v2490_v57  ;;  %v1676_v8 = vld [vmem:[#allocation9 + $0x20] ss:$8 sm:$0xf] }
 0x488   :  { %v1425_v59 = vpop.permute.xlu1 %1424  ;;  %v1557_v19 = vpop.permute.xlu0 %1556 }
 0x489   :  { %v1432_v3 = vsel %vm619_vm3, %v2913_v7, %v1425_v59  ;;  %v1431_v21 = vsel %vm619_vm3, %v1425_v59, %v1427_v24  ;;  %v1577_v59 = vrot.slane %v1564_v62, %v2488_v56 }
 0x48a   :  { %v1457_v15 = vmul.f32 %v1443_v47, %v1432_v3  ;;  %v1458_v0 = vmul.f32 %v1447_v48, %v1431_v21  ;;  %v1569_v47 = vrot.slane %v1564_v62, %v2484_v53 }
 0x48c   :  { %v1429_v27 = vpop.permute.xlu1 %1428  ;;  %v2117_v23 = vpack.c.bf16 %v1457_v15, %v1401_v5  ;;  %v2118_v33 = vpack.c.bf16 %v1458_v0, %v1402_v9  ;;  %v1609_v50 = vpop.permute.xlu0 %1608 }
 0x48d   :  { %v1430_v13 = vsel %vm619_vm3, %v1427_v24, %v1429_v27  ;;  %v1433_v31 = vsel %vm619_vm3, %v1429_v27, %v2913_v7 }
 0x48e   :  { %v1456_v20 = vmul.f32 %v1439_v4, %v1433_v31  ;;  %v1459_v6 = vmul.f32 %v1451_v16, %v1430_v13  ;;  %1848 = vmatprep.subr.bf16.mxu0 %v2117_v23 }
 0x490   :  { %v2116_v28 = vpack.c.bf16 %v1456_v20, %v1400_v29  ;;  %v1499_v49 = vpop.permute.xlu1 %1498  ;;  %v2119_v32 = vpack.c.bf16 %v1459_v6, %v1403_v12  ;;  %v1613_v35 = vpop.permute.xlu0 %1612  ;;  %v1685_v29 = vrot.slane %v1676_v8, %v2486_v54 }
 0x491   :  { %v1505_v24 = vsel %vm731_vm4, %v1499_v49, %v1501_v58  ;;  %v1506_v7 = vsel %vm731_vm4, %v2939_v11, %v1499_v49 }
 0x492   :  { %v1530_v41 = vmul.f32 %v1513_v18, %v1506_v7  ;;  %v1531_v42 = vmul.f32 %v1517_v25, %v1505_v24  ;;  %1849 = vmatpush1.bf16.msra.mxu0 %v2116_v28  ;;  %1889 = vmatprep.subr.bf16.mxu1 %v2119_v32  ;;  %v1681_v25 = vrot.slane %v1676_v8, %v2484_v53 }
 0x493   :  { %1890 = vmatpush1.bf16.msra.mxu1 %v2118_v33  ;;  %v1693_v7 = vrot.slane %v1676_v8, %v2490_v57 }
 0x494   :  { %v2120_v36 = vpack.c.bf16 %v1530_v41, %v2837_v55  ;;  %v1503_v44 = vpop.permute.xlu1 %1502  ;;  %v2121_v38 = vpack.c.bf16 %v1531_v42, %v2841_v63  ;;  %v1620_v63 = vld [vmem:[#allocation9 + $0x7] ss:$8 sm:$0xf]  ;;  %v1665_v21 = vpop.permute.xlu0 %1664 }
 0x495   :  { %v1504_v45 = vsel %vm731_vm4, %v1501_v58, %v1503_v44  ;;  %v1507_v14 = vsel %vm731_vm4, %v1503_v44, %v2939_v11  ;;  %v1573_v11 = vrot.slane %v1564_v62, %v2486_v54  ;;  %v1625_v37 = vrot.slane %v1620_v63, %v2484_v53 }
 0x496   :  { %v1532_v26 = vmul.f32 %v1521_v40, %v1504_v45  ;;  %v1533_v46 = vmul.f32 %v1525_v60, %v1507_v14  ;;  %1850 = vmatprep.subr.bf16.mxu0 %v2121_v38  ;;  %v1629_v43 = vrot.slane %v1620_v63, %v2486_v54  ;;  %v1633_v39 = vrot.slane %v1620_v63, %v2488_v56 }
 0x497   :  { %1851 = vmatpush1.bf16.msra.mxu0 %v2120_v36  ;;  %v1637_v5 = vrot.slane %v1620_v63, %v2490_v57  ;;  %v1689_v54 = vrot.slane %v1676_v8, %v2488_v56  ;;  %v1720_v56 = vld [vmem:[%s3061_s7] sm:$0xf] }
 0x498   :  { %v2122_v1 = vpack.c.bf16 %v1532_v26, %v2843_v34  ;;  %v1555_v51 = vpop.permute.xlu1 %1554  ;;  %v2123_v55 = vpack.c.bf16 %v1533_v46, %v2853_v61 }
 0x499   :  { %v1561_v34 = vsel %vm815_vm5, %v1555_v51, %v1557_v19  ;;  %v1562_v61 = vsel %vm815_vm5, %v2953_v10, %v1555_v51 }
 0x49a   :  { %1891 = vmatprep.subr.bf16.mxu1 %v2123_v55  ;;  %v1586_v15 = vmul.f32 %v1569_v47, %v1562_v61  ;;  %v1587_v16 = vmul.f32 %v1573_v11, %v1561_v34 }
 0x49b   :  { %1892 = vmatpush1.bf16.msra.mxu1 %v2122_v1 }
 0x49c   :  { %v1559_v58 = vpop.permute.xlu1 %1558 }
 0x49d   :  { %v1560_v22 = vsel %vm815_vm5, %v1557_v19, %v1559_v58  ;;  %v1563_v27 = vsel %vm815_vm5, %v1559_v58, %v2953_v10  ;;  %v1669_v10 = vpop.permute.xlu0 %1668 }
 0x49e   :  { %v1588_v12 = vmul.f32 %v1577_v59, %v1560_v22  ;;  %v1589_v20 = vmul.f32 %v1581_v2, %v1563_v27  ;;  %v1928_v27 = vld [vmem:[%s3062_s8] sm:$0xff]  ;;  %s2317_s8 = smov [#allocation10]  }
 0x4a0   :  { %v1611_v48 = vpop.permute.xlu1 %1610 }
 0x4a1   :  { %v1617_v3 = vsel %vm899_vm6, %v1611_v48, %v1613_v35  ;;  %v1618_v4 = vsel %vm899_vm6, %v1609_v50, %v1611_v48 }
 0x4a2   :  { %v1642_v17 = vmul.f32 %v1625_v37, %v1618_v4  ;;  %v1643_v30 = vmul.f32 %v1629_v43, %v1617_v3 }
 0x4a4   :  { %v2124_v23 = vpack.c.bf16 %v1642_v17, %v1586_v15  ;;  %v1615_v18 = vpop.permute.xlu1 %1614  ;;  %v2125_v0 = vpack.c.bf16 %v1643_v30, %v1587_v16 }
 0x4a5   :  { %v1616_v13 = vsel %vm899_vm6, %v1613_v35, %v1615_v18  ;;  %v1619_v31 = vsel %vm899_vm6, %v1615_v18, %v1609_v50 }
 0x4a6   :  { %v1644_v6 = vmul.f32 %v1633_v39, %v1616_v13  ;;  %v1645_v9 = vmul.f32 %v1637_v5, %v1619_v31  ;;  %1852 = vmatprep.subr.bf16.mxu0 %v2125_v0  ;;  %v1929_v0 = vld [vmem:[%s3063_s9] sm:$0xff]  ;;  %s2006_s9 = sshll.u32 %s2317_s8, 4  ;;  %s2007_s9 = int_to_ptr.vmem [resolvable:$true] %s2006_s9 }
 0x4a7   :  { %1853 = vmatpush1.bf16.msra.mxu0 %v2124_v23  ;;  %s2274_s12 = scalar_lea.vmem %s2007_s9, 512  ;;  %p2279_p11 = scmp.lt.s32.totalorder %s2007_s9, %s2007_s9 }
 0x4a8   :  { %v2126_v19 = vpack.c.bf16 %v1644_v6, %v1588_v12  ;;  %v1667_v28 = vpop.permute.xlu1 %1666  ;;  %v2127_v49 = vpack.c.bf16 %v1645_v9, %v1589_v20  ;;  %p2275_p10 = scmp.ne.s32.totalorder %s2007_s9, %s2274_s12  ;;  %p2280_p12 = scmp.lt.s32.totalorder %s2274_s12, %s2274_s12 }
 0x4a9   :  { %v1673_v32 = vsel %vm983_vm7, %v1667_v28, %v1669_v10  ;;  %v1674_v33 = vsel %vm983_vm7, %v1665_v21, %v1667_v28 }
 0x4aa   :  { %v1698_v24 = vmul.f32 %v1681_v25, %v1674_v33  ;;  %v1699_v53 = vmul.f32 %v1685_v29, %v1673_v32  ;;  %1893 = vmatprep.subr.bf16.mxu1 %v2127_v49  ;;  %p2281_p13 = por %p2280_p12, %p2279_p11 }
 0x4ab   :  { %1894 = vmatpush1.bf16.msra.mxu1 %v2126_v19 }
 0x4ac   :  { %v2128_v40 = vpack.c.bf16 %v1698_v24, %v1698_v24  ;;  %v2129_v41 = vpack.c.bf16 %v1699_v53, %v1699_v53  ;;  %v1671_v42 = vpop.permute.xlu1 %1670  ;;  %p2282_p0 = pnand %p2281_p13, %p2275_p10 }
 0x4ad   :  { %v1672_v60 = vsel %vm983_vm7, %v1669_v10, %v1671_v42  ;;  %v1675_v36 = vsel %vm983_vm7, %v1671_v42, %v1665_v21 }
 0x4ae   :  { %v1700_v44 = vmul.f32 %v1689_v54, %v1672_v60  ;;  %v1701_v38 = vmul.f32 %v1693_v7, %v1675_v36  ;;  %2090 = vmatprep.subr.msk.bf16.mxu0 %vm1833_vm9, %v2129_v41  ;;  %v1835_v45 = vsel %vm1833_vm9, %v2128_v40, 0 }
 0x4af   :  { %1855 = vmatpush1.bf16.msra.mxu0 %v1835_v45 }
 0x4b0   :  { %v2130_v57 = vpack.c.bf16 %v1700_v44, %v1700_v44  ;;  %v2131_v14 = vpack.c.bf16 %v1701_v38, %v1701_v38 }
 0x4b2   :  { %2091 = vmatmul.mubr.msk.bf16.vlgmr.msra.gmra.mrb[8].mxu0 %vm1829_vm10, %v1720_v56  ;;  %2092 = vmatprep.subr.msk.bf16.mxu1 %vm1833_vm9, %v2131_v14  ;;  %v1841_v52 = vsel %vm1833_vm9, %v2130_v57, 0 }
 0x4b3   :  { %1896 = vmatpush1.bf16.msra.mxu1 %v1841_v52 }
 0x4b6   :  { %2093 = vmatmul.mubr.msk.bf16.vlgmr.msra.gmra.mrb[8].mxu1 %vm1829_vm10, %v1720_v56 }
 0x585   :  { %v1880_v50 = vpop.f32.mrb[8].mxu0 }
 0x586   :  { %v1934_v26 = vmul.f32 %v1880_v50, %v1880_v50  ;;  %v1882_v46 = vpop.f32.mrb[9].mxu0 }
 0x587   :  { %v1930_v1 = vadd.f32 %v1882_v46, %v1880_v50  ;;  %v1935_v51 = vmul.f32 %v1882_v46, %v1882_v46  ;;  %v1884_v55 = vpop.f32.mrb[10].mxu0 }
 0x588   :  { %v1885_v62 = vpop.f32.mrb[11].mxu0 }
 0x589   :  { %v1921_v63 = vpop.f32.mrb[8].mxu1  ;;  %1931 = vadd.xlane.f32.xlu0 %v1930_v1  ;;  %v1936_v35 = vadd.f32 %v1935_v51, %v1934_v26 }
 0x58a   :  { %v1967_v58 = vmul.f32 %v1921_v63, %v1921_v63  ;;  %v1923_v47 = vpop.f32.mrb[9].mxu1 }
 0x58b   :  { %v1963_v11 = vadd.f32 %v1923_v47, %v1921_v63  ;;  %v1968_v37 = vmul.f32 %v1923_v47, %v1923_v47  ;;  %v1925_v43 = vpop.f32.mrb[10].mxu1 }
 0x58c   :  { %v1926_v34 = vpop.f32.mrb[11].mxu1 }
 0x58d   :  { %1937 = vadd.xlane.f32.xlu0 %v1936_v35  ;;  %1964 = vadd.xlane.f32.xlu1 %v1963_v11  ;;  %v1969_v61 = vadd.f32 %v1968_v37, %v1967_v58 }
 0x591   :  { %1970 = vadd.xlane.f32.xlu0 %v1969_v61 }
 0x616   :  { %v1932_v59 = vpop.xlane.xlu0 %1931 }
 0x617   :  { %v1933_v2 = vmul.f32 0.00390625, %v1932_v59 }
 0x619   :  { %v1940_v4 = vmul.f32 %v1933_v2, %v1933_v2 }
 0x61a   :  { %v1938_v48 = vpop.xlane.xlu0 %1937  ;;  %v1965_v3 = vpop.xlane.xlu1 %1964 }
 0x61b   :  { %v1939_v39 = vmul.f32 0.00390625, %v1938_v48  ;;  %v1966_v5 = vmul.f32 0.00390625, %v1965_v3 }
 0x61d   :  { %v1941_v21 = vsub.f32 %v1939_v39, %v1940_v4  ;;  %v1973_v15 = vmul.f32 %v1966_v5, %v1966_v5 }
 0x61e   :  { %v1971_v16 = vpop.xlane.xlu0 %1970 }
 0x61f   :  { %v1942_v17 = vadd.f32 1e-05, %v1941_v21  ;;  %v1972_v30 = vmul.f32 0.00390625, %v1971_v16 }
 0x621   :  { %2204 = vrsqrt.f32 %v1942_v17  ;;  %v1974_v8 = vsub.f32 %v1972_v30, %v1973_v15 }
 0x623   :  { %v1975_v22 = vadd.f32 1e-05, %v1974_v8 }
 0x625   :  { %2206 = vrsqrt.f32 %v1975_v22 }
 0x62b   :  { %v2205_v23 = vpop.eup %2204 }
 0x62c   :  { %v1944_v18 = vmul.f32 %v2205_v23, %v1928_v27 }
 0x62e   :  { %1949 = vperm.xlu1 %2148, %v1944_v18   ;;  %v1945_v13 = vmul.f32 %v1944_v18, %v1933_v2 }
 0x62f   :  { %v2207_v31 = vpop.eup %2206 }
 0x630   :  { %v1946_v25 = vsub.f32 %v1929_v0, %v1945_v13  ;;  %v1977_v29 = vmul.f32 %v2207_v31, %v1928_v27 }
 0x632   :  { %1956 = vperm.xlu0 %2149, %v1946_v25   ;;  %1982 = vperm.xlu1 %2148, %v1977_v29   ;;  %v1978_v12 = vmul.f32 %v1977_v29, %v1966_v5 }
 0x634   :  { %v1979_v20 = vsub.f32 %v1929_v0, %v1978_v12 }
 0x636   :  { %1989 = vperm.xlu1 %2148, %v1979_v20  }
 0x6ad   :  { %v1950_v6 = vpop.permute.xlu1 %1949 }
 0x6ae   :  { %v1952_v9 = vmul.f32 %v1950_v6, %v1880_v50  ;;  %v1953_v10 = vmul.f32 %v1950_v6, %v1882_v46 }
 0x6b1   :  { %v1983_v19 = vpop.permute.xlu1 %1982  ;;  %v1957_v28 = vpop.permute.xlu0 %1956 }
 0x6b2   :  { %v1959_v49 = vadd.f32 %v1957_v28, %v1952_v9  ;;  %v1960_v32 = vadd.f32 %v1957_v28, %v1953_v10  ;;  %v1985_v33 = vmul.f32 %v1983_v19, %v1921_v63  ;;  %v1986_v24 = vmul.f32 %v1983_v19, %v1923_v47 }
 0x6b4   :  { %v1961_v53 = vmax.f32 %v1959_v49, 0.0  ;;  %v1962_v54 = vmax.f32 %v1960_v32, 0.0 }
 0x6b5   :  { %v1990_v7 = vpop.permute.xlu1 %1989 }
 0x6b6   :  { %1996 = vst [vmem:[#allocation10] sm:$0xff] %v1961_v53  ;;  %1997 = vst [vmem:[#allocation10 + $0x8] sm:$0xff] %v1962_v54  ;;  %v1992_v40 = vadd.f32 %v1990_v7, %v1985_v33  ;;  %v1993_v41 = vadd.f32 %v1990_v7, %v1986_v24 }
 0x6b8   :  { %v1994_v42 = vmax.f32 %v1992_v40, 0.0  ;;  %v1995_v60 = vmax.f32 %v1993_v41, 0.0 }
 0x6ba   :  { %1998 = vst [vmem:[#allocation10 + $0x10] sm:$0xff] %v1994_v42  ;;  %1999 = vst [vmem:[#allocation10 + $0x18] sm:$0xff] %v1995_v60 }
 0x6bb   :  { %2285 = shalt.err (!%p2282_p0)
}
 0x6bc   :  { %s2286_s13 = scalar_lea.hbm %s3064_s10, 512 }
 0x6bd   :  { %p2287_p1 = scmp.ne.s32.totalorder %s3064_s10, %s2286_s13  ;;  %p2290_p2 = scmp.lt.u32.totalorder %s2286_s13, %s3064_s10 }
 0x6bf   :  { %p2292_p3 = pnand %p2290_p2, %p2287_p1 }
 0x6c1   :  { %2295 = shalt.err (!%p2292_p3)
}
 0x6c2   :  { %2009 = dma.vmem_to_hbm [thread:$0]  %s2007_s9, 512, %s3064_s10, [#allocation6]  }
 0x6c3   :  { %2300 = dma.done.wait [#allocation6], 512  }
 0x6c4   :  { %2301 = vsyncadd [#allocation6], 4294966784 }
 0x6c5   :  { %2013 = vsyncpa [#allocation5], 1 }
 0x6c6   :  { %2014 = vsyncpa [#allocation8], 1 }
 0x6c7   :  { %2015 = vsyncpa [#allocation6], 1 }

</bundles_post_ra>
